<compile_context>
chip_gen: v7x
topology: tpu7x:2x2x1
jax: 0.10.0
libtpu: 0.0.40
codegen_flags: <defaults>
</compile_context>

<pallas_src>
import jax
import jax.numpy as jnp
from jax import lax
from jax.experimental import pallas as pl
from jax.experimental.pallas import tpu as pltpu

NORM_EPS = 1e-5


def fold_double_gate_weights(w1, b1, w2, b2, w7, bn_gamma, bn_beta,
                             bn_mean, bn_var, H, W):
    """Weights-only precompute.  Call ONCE per weight set and reuse.

    Returns:
      m_op:   (2*HW, HW) bf16  folded 7x7 "same" conv + BN scale, stacked so
                               rows [0, HW) act on the channel-max map and
                               rows [HW, 2*HW) on the channel-mean map.
      packed: (2*Ch+1, C) f32  rows 0..Ch-1 = W1, rows Ch..2Ch-1 = W2^T,
                               last row = b2.
      sc:     (Ch+1,)     f32  [b1..., folded BN bias]  (goes to SMEM).
    """
    C = w2.shape[0]
    Ch = w1.shape[0]
    HW = H * W

    # Fold the SpatialGate BatchNorm (eval mode) into a scale and a bias.
    bn_s = bn_gamma / jnp.sqrt(bn_var + NORM_EPS)            # (1,)
    bn_b = bn_beta - bn_mean * bn_s                          # (1,)

    # Folded 7x7 "same" conv as a dense (2, HW, HW) linear map, built with one
    # vectorised gather (no per-tap scatter dispatches).
    # NOTE: operator is O(HW^2) — fine for small gate resolutions (512 KiB at
    # 16x16); for large H*W (>= 64x64, esp. v7x's 64 MiB VMEM) switch to a
    # 49-tap pltpu.roll shifted formulation instead of a dense operator.
    idx = jnp.arange(HW)
    hh, ww = idx // W, idx % W
    dh = hh[:, None] - hh[None, :]                           # src - dst row offset
    dw = ww[:, None] - ww[None, :]
    valid = (jnp.abs(dh) <= 3) & (jnp.abs(dw) <= 3)
    kh = jnp.clip(dh + 3, 0, 6)
    kw = jnp.clip(dw + 3, 0, 6)
    taps = w7[0][:, kh, kw] * bn_s[0]                        # (2, HW, HW) [ci, src, dst]
    m_op = jnp.where(valid[None], taps, 0.0)
    m_op = m_op.reshape(2 * HW, HW).astype(jnp.bfloat16)     # stacked bf16 RHS

    packed = jnp.concatenate(
        [w1, jnp.transpose(w2), b2.reshape(1, C)], axis=0).astype(jnp.float32)
    sc = jnp.concatenate([b1, bn_b]).astype(jnp.float32)     # (Ch+1,)
    return m_op, packed, sc


def double_gate_pallas(x_nchw, m_op, packed, sc):
    """x_nchw: (N, C, H, W) float32. Returns (N, C, H, W) float32."""
    N, C, H, W = x_nchw.shape
    HW = H * W
    Ch = (packed.shape[0] - 1) // 2

    # Images per grid step: amortize per-step pipeline overhead, but keep the
    # grid length >= 2 so v7x's two TensorCores both get work.
    B = max(1, min(8, N // 2))
    grid_n = pl.cdiv(N, B)
    n_pad = grid_n * B

    x = x_nchw.reshape(N, C, HW)               # free: NCHW is contiguous
    if n_pad != N:                              # pad batch; padded rows are discarded
        x = jnp.pad(x, ((0, n_pad - N), (0, 0), (0, 0)))

    def kernel(x_ref, pk_ref, sc_ref, m_ref, o_ref):
        xb = x_ref[...]                                      # (B, C, HW) f32
        pk = pk_ref[...]                                     # (2*Ch+1, C) f32
        w1_rows = [pk[j][None, :] for j in range(Ch)]        # (1, C) each
        w2_cols = [pk[Ch + j][None, :] for j in range(Ch)]   # (1, C) each
        b1_sc = [sc_ref[j] for j in range(Ch)]               # SMEM scalars
        b2_row = pk[2 * Ch][None, :]                         # (1, C)

        # ---------------- ChannelGate ----------------
        avg_p = jnp.mean(xb, axis=2)                         # (B, C)
        max_p = jnp.max(xb, axis=2)                          # (B, C)

        def mlp_no_b2(p):                                    # (B, C) -> (B, C)
            # hidden = Ch (tiny): broadcast FMAs + lane reductions on VPU/XLU,
            # no degenerate K=Ch MXU pushes.  b2 added once by the caller.
            att = jnp.zeros_like(p)
            for j in range(Ch):
                h = jnp.sum(p * w1_rows[j], axis=1, keepdims=True) + b1_sc[j]
                h = jnp.maximum(h, 0.0)                      # (B, 1)
                att = att + h * w2_cols[j]                   # (B, C)
            return att

        att = mlp_no_b2(avg_p) + mlp_no_b2(max_p) + 2.0 * b2_row
        c_scale = pl.reciprocal(1.0 + jnp.exp(-att), approx=True)   # sigmoid
        x1 = xb * c_scale[:, :, None]                        # (B, C, HW), f32

        # ---------------- SpatialGate ----------------
        cmax = jnp.max(x1, axis=1)                           # (B, HW)
        cmean = jnp.mean(x1, axis=1)                         # (B, HW)
        # Fused folded-conv(+BN) matmul: one (B, 2*HW) x (2*HW, HW) MXU push.
        lhs = jnp.concatenate([cmax, cmean], axis=-1)        # (B, 2*HW)
        logits = jnp.dot(lhs.astype(jnp.bfloat16), m_ref[...],
                         preferred_element_type=jnp.float32) + sc_ref[Ch]
        s_scale = pl.reciprocal(1.0 + jnp.exp(-logits), approx=True)
        o_ref[...] = (x1 * s_scale[:, None, :]).astype(o_ref.dtype)

    out = pl.pallas_call(
        kernel,
        out_shape=jax.ShapeDtypeStruct((n_pad, C, HW), x_nchw.dtype),
        grid_spec=pltpu.PrefetchScalarGridSpec(
            num_scalar_prefetch=0,
            grid=(grid_n,),
            in_specs=[
                pl.BlockSpec((B, C, HW), lambda n: (n, 0, 0)),
                # constants: never re-fetched -> single-buffer them
                pl.BlockSpec((2 * Ch + 1, C), lambda n: (0, 0),
                             pipeline_mode=pl.Buffered(1)),
                pl.BlockSpec(memory_space=pltpu.MemorySpace.SMEM),
                pl.BlockSpec((2 * HW, HW), lambda n: (0, 0),
                             pipeline_mode=pl.Buffered(1)),
            ],
            out_specs=pl.BlockSpec((B, C, HW), lambda n: (n, 0, 0)),
        ),
        compiler_params=pltpu.CompilerParams(
            dimension_semantics=("parallel",)),
    )(x, packed, sc, m_op)

    return out[:N].reshape(N, C, H, W)


def double_gate_reference(x, w1, b1, w2, b2, w7, gamma, beta, mean, var):
    """Pure-JAX NCHW reference mirroring the PyTorch forward (eval-mode BN)."""
    avg = jnp.mean(x, axis=(2, 3))                            # (N, C)
    mx = jnp.max(x, axis=(2, 3))                              # (N, C)

    def mlp(p):
        h = jnp.maximum(p @ w1.T + b1, 0.0)
        return h @ w2.T + b2

    c_scale = jax.nn.sigmoid(mlp(avg) + mlp(mx))[:, :, None, None]
    x1 = x * c_scale

    cmap = jnp.concatenate([jnp.max(x1, axis=1, keepdims=True),
                            jnp.mean(x1, axis=1, keepdims=True)], axis=1)
    dn = ("NCHW", "OIHW", "NCHW")
    y = lax.conv_general_dilated(cmap, w7, (1, 1), [(3, 3), (3, 3)],
                                 dimension_numbers=dn)
    inv = gamma / jnp.sqrt(var + NORM_EPS)
    y = (y - mean[None, :, None, None]) * inv[None, :, None, None] \
        + beta[None, :, None, None]
    s_scale = jax.nn.sigmoid(y)
    return x1 * s_scale


if __name__ == "__main__":
    # gate_channels must be >= reduction_ratio (16) for a non-empty MLP hidden
    # layer -> C = 32.  N = 8 exercises the batched path (B = 4, grid = 2).
    N, C, H, W = 8, 32, 16, 16
    R = 16
    Ch = C // R                                              # = 2

    key = jax.random.PRNGKey(0)
    kx, k1, kb1, k2, kb2, k7, kg, kb, km, kv = jax.random.split(key, 10)

    x = jax.random.normal(kx, (N, C, H, W), jnp.float32)
    # ChannelGate MLP: Linear(C, Ch) -> ReLU -> Linear(Ch, C), PyTorch (out,in).
    w1 = jax.random.normal(k1, (Ch, C), jnp.float32) * 0.2
    b1 = jax.random.normal(kb1, (Ch,), jnp.float32) * 0.1
    w2 = jax.random.normal(k2, (C, Ch), jnp.float32) * 0.2
    b2 = jax.random.normal(kb2, (C,), jnp.float32) * 0.1
    # SpatialGate: Conv2d(2, 1, 7, padding=3, bias=False) + BatchNorm2d(1).
    w7 = jax.random.normal(k7, (1, 2, 7, 7), jnp.float32) * 0.1
    gamma = 1.0 + 0.1 * jax.random.normal(kg, (1,), jnp.float32)
    beta = 0.1 * jax.random.normal(kb, (1,), jnp.float32)
    run_mean = 0.1 * jax.random.normal(km, (1,), jnp.float32)
    run_var = 1.0 + 0.1 * jax.random.uniform(kv, (1,), jnp.float32)

    # Weights-only precompute: done once per weight set, reused every forward.
    folded = fold_double_gate_weights(w1, b1, w2, b2, w7, gamma, beta,
                                      run_mean, run_var, H, W)

    apply_fn = jax.jit(double_gate_pallas)
    out = jax.block_until_ready(apply_fn(x, *folded))

    ref = double_gate_reference(x, w1, b1, w2, b2, w7, gamma, beta,
                                run_mean, run_var)
    assert out.shape == (N, C, H, W)
    err = jnp.max(jnp.abs(out - ref))
    assert jnp.allclose(out, ref, atol=2e-2, rtol=2e-2), f"max abs err {err}"

    print("KERNEL_OK")
</pallas_src>

<mosaic_0001>
module attributes {stable_mosaic.version = 11 : i64} {
  func.func @kernel(%arg0: i32, %arg1: memref<4x32x256xf32, #tpu.memory_space<vmem>>, %arg2: memref<5x32xf32, #tpu.memory_space<vmem>>, %arg3: memref<3xf32, #tpu.memory_space<smem>>, %arg4: memref<512x256xbf16, #tpu.memory_space<vmem>>, %arg5: memref<4x32x256xf32, #tpu.memory_space<vmem>>) attributes {dimension_semantics = [#tpu.dimension_semantics<parallel>], iteration_bounds = array<i64: 2>, scalar_prefetch = 0 : i64, scratch_operands = 0 : i64, tpu.core_type = #tpu.core_type<tc>, window_params = [{transform_indices = @transform_0, window_bounds = array<i64: 4, 32, 256>}, {pipeline_mode = #tpu.pipeline_mode<synchronous>, transform_indices = @transform_1, window_bounds = array<i64: 5, 32>}, {transform_indices = @transform_2, window_bounds = array<i64: 3>}, {pipeline_mode = #tpu.pipeline_mode<synchronous>, transform_indices = @transform_3, window_bounds = array<i64: 512, 256>}, {transform_indices = @transform_4, window_bounds = array<i64: 4, 32, 256>}]} {
    %c0 = arith.constant 0 : index
    %c0_0 = arith.constant 0 : index
    %c0_1 = arith.constant 0 : index
    %0 = vector.load %arg1[%c0, %c0_0, %c0_1] : memref<4x32x256xf32, #tpu.memory_space<vmem>>, vector<4x32x256xf32>
    %c0_2 = arith.constant 0 : index
    %c0_3 = arith.constant 0 : index
    %1 = vector.load %arg2[%c0_2, %c0_3] : memref<5x32xf32, #tpu.memory_space<vmem>>, vector<5x32xf32>
    %2 = vector.extract_strided_slice %1 {offsets = [0, 0], sizes = [1, 32], strides = [1, 1]} : vector<5x32xf32> to vector<1x32xf32>
    %3 = vector.shape_cast %2 : vector<1x32xf32> to vector<32xf32>
    %4 = vector.shape_cast %3 : vector<32xf32> to vector<1x32xf32>
    %5 = vector.extract_strided_slice %1 {offsets = [1, 0], sizes = [1, 32], strides = [1, 1]} : vector<5x32xf32> to vector<1x32xf32>
    %6 = vector.shape_cast %5 : vector<1x32xf32> to vector<32xf32>
    %7 = vector.shape_cast %6 : vector<32xf32> to vector<1x32xf32>
    %8 = vector.extract_strided_slice %1 {offsets = [2, 0], sizes = [1, 32], strides = [1, 1]} : vector<5x32xf32> to vector<1x32xf32>
    %9 = vector.shape_cast %8 : vector<1x32xf32> to vector<32xf32>
    %10 = vector.shape_cast %9 : vector<32xf32> to vector<1x32xf32>
    %11 = vector.extract_strided_slice %1 {offsets = [3, 0], sizes = [1, 32], strides = [1, 1]} : vector<5x32xf32> to vector<1x32xf32>
    %12 = vector.shape_cast %11 : vector<1x32xf32> to vector<32xf32>
    %13 = vector.shape_cast %12 : vector<32xf32> to vector<1x32xf32>
    %c0_4 = arith.constant 0 : index
    %14 = memref.load %arg3[%c0_4] : memref<3xf32, #tpu.memory_space<smem>>
    %c1 = arith.constant 1 : index
    %15 = memref.load %arg3[%c1] : memref<3xf32, #tpu.memory_space<smem>>
    %16 = vector.extract_strided_slice %1 {offsets = [4, 0], sizes = [1, 32], strides = [1, 1]} : vector<5x32xf32> to vector<1x32xf32>
    %17 = vector.shape_cast %16 : vector<1x32xf32> to vector<32xf32>
    %18 = vector.shape_cast %17 : vector<32xf32> to vector<1x32xf32>
    %cst = arith.constant dense<0.000000e+00> : vector<4x32xf32>
    %19 = vector.multi_reduction <add>, %0, %cst [2] : vector<4x32x256xf32> to vector<4x32xf32>
    %cst_5 = arith.constant 2.560000e+02 : f32
    %20 = vector.broadcast %cst_5 : f32 to vector<4x32xf32>
    %21 = arith.divf %19, %20 : vector<4x32xf32>
    %cst_6 = arith.constant dense<0xFF800000> : vector<4x32xf32>
    %22 = vector.multi_reduction <maximumf>, %0, %cst_6 [2] : vector<4x32x256xf32> to vector<4x32xf32>
    %cst_7 = arith.constant 0.000000e+00 : f32
    %23 = vector.broadcast %cst_7 : f32 to vector<4x32xf32>
    %24 = vector.broadcast %4 : vector<1x32xf32> to vector<4x32xf32>
    %25 = arith.mulf %21, %24 : vector<4x32xf32>
    %cst_8 = arith.constant dense<0.000000e+00> : vector<4xf32>
    %26 = vector.multi_reduction <add>, %25, %cst_8 [1] : vector<4x32xf32> to vector<4xf32>
    %27 = vector.shape_cast %26 : vector<4xf32> to vector<4x1xf32>
    %28 = vector.broadcast %14 : f32 to vector<4x1xf32>
    %29 = arith.addf %27, %28 : vector<4x1xf32>
    %cst_9 = arith.constant 0.000000e+00 : f32
    %30 = vector.broadcast %cst_9 : f32 to vector<4x1xf32>
    %31 = arith.maximumf %29, %30 : vector<4x1xf32>
    %32 = vector.broadcast %31 : vector<4x1xf32> to vector<4x32xf32>
    %33 = vector.broadcast %10 : vector<1x32xf32> to vector<4x32xf32>
    %34 = arith.mulf %32, %33 : vector<4x32xf32>
    %35 = arith.addf %23, %34 : vector<4x32xf32>
    %36 = vector.broadcast %7 : vector<1x32xf32> to vector<4x32xf32>
    %37 = arith.mulf %21, %36 : vector<4x32xf32>
    %cst_10 = arith.constant dense<0.000000e+00> : vector<4xf32>
    %38 = vector.multi_reduction <add>, %37, %cst_10 [1] : vector<4x32xf32> to vector<4xf32>
    %39 = vector.shape_cast %38 : vector<4xf32> to vector<4x1xf32>
    %40 = vector.broadcast %15 : f32 to vector<4x1xf32>
    %41 = arith.addf %39, %40 : vector<4x1xf32>
    %cst_11 = arith.constant 0.000000e+00 : f32
    %42 = vector.broadcast %cst_11 : f32 to vector<4x1xf32>
    %43 = arith.maximumf %41, %42 : vector<4x1xf32>
    %44 = vector.broadcast %43 : vector<4x1xf32> to vector<4x32xf32>
    %45 = vector.broadcast %13 : vector<1x32xf32> to vector<4x32xf32>
    %46 = arith.mulf %44, %45 : vector<4x32xf32>
    %47 = arith.addf %35, %46 : vector<4x32xf32>
    %cst_12 = arith.constant 0.000000e+00 : f32
    %48 = vector.broadcast %cst_12 : f32 to vector<4x32xf32>
    %49 = vector.broadcast %4 : vector<1x32xf32> to vector<4x32xf32>
    %50 = arith.mulf %22, %49 : vector<4x32xf32>
    %cst_13 = arith.constant dense<0.000000e+00> : vector<4xf32>
    %51 = vector.multi_reduction <add>, %50, %cst_13 [1] : vector<4x32xf32> to vector<4xf32>
    %52 = vector.shape_cast %51 : vector<4xf32> to vector<4x1xf32>
    %53 = vector.broadcast %14 : f32 to vector<4x1xf32>
    %54 = arith.addf %52, %53 : vector<4x1xf32>
    %cst_14 = arith.constant 0.000000e+00 : f32
    %55 = vector.broadcast %cst_14 : f32 to vector<4x1xf32>
    %56 = arith.maximumf %54, %55 : vector<4x1xf32>
    %57 = vector.broadcast %56 : vector<4x1xf32> to vector<4x32xf32>
    %58 = vector.broadcast %10 : vector<1x32xf32> to vector<4x32xf32>
    %59 = arith.mulf %57, %58 : vector<4x32xf32>
    %60 = arith.addf %48, %59 : vector<4x32xf32>
    %61 = vector.broadcast %7 : vector<1x32xf32> to vector<4x32xf32>
    %62 = arith.mulf %22, %61 : vector<4x32xf32>
    %cst_15 = arith.constant dense<0.000000e+00> : vector<4xf32>
    %63 = vector.multi_reduction <add>, %62, %cst_15 [1] : vector<4x32xf32> to vector<4xf32>
    %64 = vector.shape_cast %63 : vector<4xf32> to vector<4x1xf32>
    %65 = vector.broadcast %15 : f32 to vector<4x1xf32>
    %66 = arith.addf %64, %65 : vector<4x1xf32>
    %cst_16 = arith.constant 0.000000e+00 : f32
    %67 = vector.broadcast %cst_16 : f32 to vector<4x1xf32>
    %68 = arith.maximumf %66, %67 : vector<4x1xf32>
    %69 = vector.broadcast %68 : vector<4x1xf32> to vector<4x32xf32>
    %70 = vector.broadcast %13 : vector<1x32xf32> to vector<4x32xf32>
    %71 = arith.mulf %69, %70 : vector<4x32xf32>
    %72 = arith.addf %60, %71 : vector<4x32xf32>
    %73 = arith.addf %47, %72 : vector<4x32xf32>
    %cst_17 = arith.constant 2.000000e+00 : f32
    %74 = vector.broadcast %cst_17 : f32 to vector<1x32xf32>
    %75 = arith.mulf %74, %18 : vector<1x32xf32>
    %76 = vector.broadcast %75 : vector<1x32xf32> to vector<4x32xf32>
    %77 = arith.addf %73, %76 : vector<4x32xf32>
    %cst_18 = arith.constant 0.000000e+00 : f32
    %78 = vector.broadcast %cst_18 : f32 to vector<4x32xf32>
    %79 = arith.subf %78, %77 : vector<4x32xf32>
    %80 = math.exp %79 : vector<4x32xf32>
    %cst_19 = arith.constant 1.000000e+00 : f32
    %81 = vector.broadcast %cst_19 : f32 to vector<4x32xf32>
    %82 = arith.addf %81, %80 : vector<4x32xf32>
    %83 = tpu.reciprocal %82 {approx = true} : vector<4x32xf32> -> vector<4x32xf32>
    %84 = vector.shape_cast %83 : vector<4x32xf32> to vector<4x32x1xf32>
    %85 = vector.broadcast %84 : vector<4x32x1xf32> to vector<4x32x256xf32>
    %86 = arith.mulf %0, %85 : vector<4x32x256xf32>
    %cst_20 = arith.constant dense<0xFF800000> : vector<4x256xf32>
    %87 = vector.multi_reduction <maximumf>, %86, %cst_20 [1] : vector<4x32x256xf32> to vector<4x256xf32>
    %cst_21 = arith.constant dense<0.000000e+00> : vector<4x256xf32>
    %88 = vector.multi_reduction <add>, %86, %cst_21 [1] : vector<4x32x256xf32> to vector<4x256xf32>
    %cst_22 = arith.constant 3.200000e+01 : f32
    %89 = vector.broadcast %cst_22 : f32 to vector<4x256xf32>
    %90 = arith.divf %88, %89 : vector<4x256xf32>
    %91 = tpu.concatenate %87, %90 in 1 : vector<4x256xf32>, vector<4x256xf32> -> vector<4x512xf32>
    %92 = arith.truncf %91 : vector<4x512xf32> to vector<4x512xbf16>
    %c0_23 = arith.constant 0 : index
    %c0_24 = arith.constant 0 : index
    %93 = vector.load %arg4[%c0_23, %c0_24] : memref<512x256xbf16, #tpu.memory_space<vmem>>, vector<512x256xbf16>
    %cst_25 = arith.constant dense<0.000000e+00> : vector<4x256xf32>
    %94 = tpu.matmul %92, %93, %cst_25 {dimension_numbers = #tpu.dot_dimension_numbers<[1], [0], [0], [1], [0, 0, 1, 1], [], []>} : vector<4x512xbf16>, vector<512x256xbf16>, vector<4x256xf32> -> vector<4x256xf32>
    %c2 = arith.constant 2 : index
    %95 = memref.load %arg3[%c2] : memref<3xf32, #tpu.memory_space<smem>>
    %96 = vector.broadcast %95 : f32 to vector<4x256xf32>
    %97 = arith.addf %94, %96 : vector<4x256xf32>
    %cst_26 = arith.constant 0.000000e+00 : f32
    %98 = vector.broadcast %cst_26 : f32 to vector<4x256xf32>
    %99 = arith.subf %98, %97 : vector<4x256xf32>
    %100 = math.exp %99 : vector<4x256xf32>
    %cst_27 = arith.constant 1.000000e+00 : f32
    %101 = vector.broadcast %cst_27 : f32 to vector<4x256xf32>
    %102 = arith.addf %101, %100 : vector<4x256xf32>
    %103 = tpu.reciprocal %102 {approx = true} : vector<4x256xf32> -> vector<4x256xf32>
    %104 = vector.shape_cast %103 : vector<4x256xf32> to vector<4x1x256xf32>
    %105 = vector.broadcast %104 : vector<4x1x256xf32> to vector<4x32x256xf32>
    %106 = arith.mulf %86, %105 : vector<4x32x256xf32>
    %c0_28 = arith.constant 0 : index
    %c0_29 = arith.constant 0 : index
    %c0_30 = arith.constant 0 : index
    %107 = vector.load %arg5[%c0_28, %c0_29, %c0_30] : memref<4x32x256xf32, #tpu.memory_space<vmem>>, vector<4x32x256xf32>
    tpu.vector_store %arg5[%c0_28, %c0_29, %c0_30], %106 {strides = array<i32>} : memref<4x32x256xf32, #tpu.memory_space<vmem>>, vector<4x32x256xf32>,
    return
  }
  func.func @transform_0(%arg0: i32) -> (i32, i32, i32) {
    %c0_i32 = arith.constant 0 : i32
    %c0_i32_0 = arith.constant 0 : i32
    %c0_i32_1 = arith.constant 0 : i32
    return %arg0, %c0_i32, %c0_i32_0 : i32, i32, i32
  }
  func.func @transform_1(%arg0: i32) -> (i32, i32) {
    %c0_i32 = arith.constant 0 : i32
    %c0_i32_0 = arith.constant 0 : i32
    %c0_i32_1 = arith.constant 0 : i32
    return %c0_i32, %c0_i32_0 : i32, i32
  }
  func.func @transform_2(%arg0: i32) -> i32 {
    %c0_i32 = arith.constant 0 : i32
    %c0_i32_0 = arith.constant 0 : i32
    return %c0_i32 : i32
  }
  func.func @transform_3(%arg0: i32) -> (i32, i32) {
    %c0_i32 = arith.constant 0 : i32
    %c0_i32_0 = arith.constant 0 : i32
    %c0_i32_1 = arith.constant 0 : i32
    return %c0_i32, %c0_i32_0 : i32, i32
  }
  func.func @transform_4(%arg0: i32) -> (i32, i32, i32) {
    %c0_i32 = arith.constant 0 : i32
    %c0_i32_0 = arith.constant 0 : i32
    %c0_i32_1 = arith.constant 0 : i32
    return %arg0, %c0_i32, %c0_i32_0 : i32, i32, i32
  }
}

</mosaic_0001>

<bundles_post_ra>
// kernel: double_gate_pallas.1
= control target key start
LH: loop header
LB: loop body
LE: loop exit
PB: predicated region body
PF: predicated region fallthrough
CT: control target
= control target key end

     0   :  { %9 = vsyncpa [#allocation3], 0  ;;  %s2399_s15 = smov 0   ;;  %s3351_s0 = inlined_call_operand.vmem [shape: f32[8,32,256], index: 0, kind: input, shape index: {}]   ;;  %s3352_s1 = inlined_call_operand.vmem [shape: f32[5,32], index: 1, kind: input, shape index: {}]   ;;  %s3353_s2 = inlined_call_operand.vmem [shape: f32[3], index: 2, kind: input, shape index: {}]   ;;  %s3354_s3 = inlined_call_operand.vmem [shape: bf16[512,256], index: 3, kind: input, shape index: {}]   ;;  %s3355_s4 = inlined_call_operand.vmem [shape: f32[8,32,256], index: 4, kind: output, shape index: {}]  }
   0x1 LB: > { %s2094_s16 = sadd.s32 4294967295, %s2369_s15   ;;  %p2096_p0 = scmp.ge.s32.totalorder %s2369_s15, 1  ;;  %s2369_s15 = sphi %s2399_s15, %s15_s15  }
   0x2   : > { %p135_p1 = scmp.lt.s32.totalorder %s2369_s15, 3  ;;  %s151_s19 = sshll.u32 %s3353_s2, 4  ;;  %s152_s19 = int_to_ptr.vmem [resolvable:$true] %s151_s19 }
   0x3   : > { %p2414_p3 = scmp.eq.s32.totalorder %s2094_s16, 0  ;;  %s2344_s22 = scalar_lea.vmem %s152_s19, 16 }
   0x4   : > { %p2410_p2 = pnand %p2096_p0, %p135_p1  ;;  %p2345_p6 = scmp.ne.s32.totalorder %s152_s19, %s2344_s22 }
   0x5   : > { %p2352_p10 = scmp.lt.s32.totalorder %s152_s19, %s152_s19  ;;  %p2353_p11 = scmp.lt.s32.totalorder %s2344_s22, %s2344_s22 }
   0x6   : > { %p2185_p4 = pneg %p2410_p2 }
   0x7   : > { %p2354_p12 = por %p2353_p11, %p2352_p10 }
   0x8   : > { %p2186_p5 = pnand %p2414_p3, %p2185_p4 }
   0xa   : > { %p2346_p7 = pneg %p2186_p5 }
   0xc   : > { %p2347_p8 = pnand %p2346_p7, %p2345_p6 }
   0xe   : > { %p2348_p9 = pneg %p2347_p8 }
  0x10   : > { %p2355_p13 = pnand %p2354_p12, %p2348_p9 }
  0x12   : > { %2358 = shalt.err (!%p2355_p13)
}
  0x13   : > { %s2371_s23 = smov [#allocation2]   ;;  %177 = sbr.rel (%p2410_p2) target bundleno = 1148 (0x47c), region = 36 }
  0x14   : > { %2188 = dma.vmem_to_smem (!%p2186_p5), %s152_s19, 16, %s2371_s23, [#allocation3]  }
  0x1a   : > { %2364 = dma.done.wait (%p2414_p3), [#allocation3], 16  }
  0x1b   : > { %2366 = vsyncadd (%p2414_p3), [#allocation3], 4294967280 }
  0x1c   : > { %183 = sfence }
  0x1d   : > { %s2101_s24 = sshll.u32 %s2094_s16, 2  ;;  %vm483_vm0 = vcmask 130112   ;;  %vm490_vm1 = vcmask 195712   ;;  %vm497_vm2 = vcmask 261312   ;;  %vm556_vm3 = vcmask 1041409   ;;  %s253_s5 = sld [smem:[#allocation2]] }
  0x1e   : > { %p207_p0 = scmp.lt.s32.totalorder %s2101_s24, 7  ;;  %vm558_vm4 = vcmask 1042434   ;;  %vm560_vm5 = vcmask 1043459   ;;  %vm563_vm6 = vcmask 257024   ;;  %s2107_s6 = sld [smem:[#allocation2 + $0x1]] }
  0x20   : > { %s3403_s24 = smov (!%p207_p0, %s2101_s24), 7 }
  0x21   : > { %s2175_s25 = sshll.u32 %s3403_s24, 6 }
  0x22   : > { %s2436_s28 = scalar_lea.vmem %s3351_s0, %s2175_s25 }
  0x23   : > { %v228_v0 = vld [vmem:[%s2436_s28 + $0x40] sm:$0xff]  ;;  %v229_v1 = vld [vmem:[%s2436_s28 + $0x48] sm:$0xff]  ;;  %v230_v5 = vld [vmem:[%s2436_s28 + $0x50] sm:$0xff] }
  0x24   : > { %v220_v2 = vld [vmem:[%s2436_s28] sm:$0xff]  ;;  %v267_v3 = vadd.f32 %v229_v1, %v228_v0  ;;  %v221_v4 = vld [vmem:[%s2436_s28 + $0x8] sm:$0xff]  ;;  %v231_v6 = vld [vmem:[%s2436_s28 + $0x58] sm:$0xff]  ;;  %v332_v40 = vmax.f32 %v228_v0, %v229_v1  ;;  %v368_v0 = vlaneseq }
  0x25   : > { %v255_v7 = vadd.f32 %v221_v4, %v220_v2  ;;  %v222_v8 = vld [vmem:[%s2436_s28 + $0x10] sm:$0xff]  ;;  %v223_v9 = vld [vmem:[%s2436_s28 + $0x18] sm:$0xff]  ;;  %v270_v10 = vadd.f32 %v231_v6, %v230_v5  ;;  %v232_v12 = vld [vmem:[%s2436_s28 + $0x60] sm:$0xff]  ;;  %v320_v38 = vmax.f32 %v220_v2, %v221_v4  ;;  %v335_v45 = vmax.f32 %v230_v5, %v231_v6 }
  0x26   : > { %268 = vadd.xlane.f32.xlu1 %v267_v3  ;;  %v258_v11 = vadd.f32 %v223_v9, %v222_v8  ;;  %v233_v13 = vld [vmem:[%s2436_s28 + $0x68] sm:$0xff]  ;;  %v224_v14 = vld [vmem:[%s2436_s28 + $0x20] sm:$0xff]  ;;  %v238_v18 = vld [vmem:[%s2436_s28 + $0x90] sm:$0xff]  ;;  %v323_v41 = vmax.f32 %v222_v8, %v223_v9  ;;  %v2471_v1 = vshrl.u32 %v368_v0, 7 }
  0x27   : > { %256 = vadd.xlane.f32.xlu0 %v255_v7  ;;  %v225_v15 = vld [vmem:[%s2436_s28 + $0x28] sm:$0xff]  ;;  %v273_v16 = vadd.f32 %v233_v13, %v232_v12  ;;  %v239_v19 = vld [vmem:[%s2436_s28 + $0x98] sm:$0xff]  ;;  %v236_v20 = vld [vmem:[%s2436_s28 + $0x80] sm:$0xff]  ;;  %v338_v51 = vmax.f32 %v232_v12, %v233_v13  ;;  %v2372_v7 = vmov 0  }
  0x28   : > { %v261_v17 = vadd.f32 %v225_v15, %v224_v14  ;;  %v237_v21 = vld [vmem:[%s2436_s28 + $0x88] sm:$0xff]  ;;  %v234_v22 = vld [vmem:[%s2436_s28 + $0x70] sm:$0xff]  ;;  %v235_v23 = vld [vmem:[%s2436_s28 + $0x78] sm:$0xff]  ;;  %v282_v24 = vadd.f32 %v239_v19, %v238_v18  ;;  %v326_v48 = vmax.f32 %v224_v14, %v225_v15  ;;  %v347_v55 = vmax.f32 %v238_v18, %v239_v19  ;;  %2203 = vset.pattern.permute.xlu0 %v2372_v7 }
  0x29   : > { %v226_v25 = vld [vmem:[%s2436_s28 + $0x30] sm:$0xff]  ;;  %v227_v26 = vld [vmem:[%s2436_s28 + $0x38] sm:$0xff]  ;;  %v279_v27 = vadd.f32 %v237_v21, %v236_v20  ;;  %v244_v28 = vld [vmem:[%s2436_s28 + $0xc0] sm:$0xff]  ;;  %v276_v30 = vadd.f32 %v235_v23, %v234_v22  ;;  %v344_v50 = vmax.f32 %v236_v20, %v237_v21  ;;  %v341_v56 = vmax.f32 %v234_v22, %v235_v23  ;;  %2202 = vset.pattern.permute.xlu1 %v2372_v7 }
  0x2a   : > { %271 = vadd.xlane.f32.xlu1 %v270_v10  ;;  %v245_v29 = vld [vmem:[%s2436_s28 + $0xc8] sm:$0xff]  ;;  %v240_v31 = vld [vmem:[%s2436_s28 + $0xa0] sm:$0xff]  ;;  %v264_v33 = vadd.f32 %v227_v26, %v226_v25  ;;  %v246_v35 = vld [vmem:[%s2436_s28 + $0xd0] sm:$0xff]  ;;  %v329_v57 = vmax.f32 %v226_v25, %v227_v26  ;;  %v2474_v2 = vsub.s32 0, %v2471_v1  ;;  %v2484_v5 = vsub.s32 1, %v2471_v1 }
  0x2b   : > { %259 = vadd.xlane.f32.xlu0 %v258_v11  ;;  %v241_v32 = vld [vmem:[%s2436_s28 + $0xa8] sm:$0xff]  ;;  %v291_v34 = vadd.f32 %v245_v29, %v244_v28  ;;  %v247_v36 = vld [vmem:[%s2436_s28 + $0xd8] sm:$0xff]  ;;  %v242_v42 = vld [vmem:[%s2436_s28 + $0xb0] sm:$0xff]  ;;  %v356_v58 = vmax.f32 %v244_v28, %v245_v29 }
  0x2c   : > { %v285_v37 = vadd.f32 %v241_v32, %v240_v31  ;;  %v294_v39 = vadd.f32 %v247_v36, %v246_v35  ;;  %v243_v43 = vld [vmem:[%s2436_s28 + $0xb8] sm:$0xff]  ;;  %v248_v46 = vld [vmem:[%s2436_s28 + $0xe0] sm:$0xff]  ;;  %v249_v47 = vld [vmem:[%s2436_s28 + $0xe8] sm:$0xff]  ;;  %v350_v59 = vmax.f32 %v240_v31, %v241_v32  ;;  %v359_v61 = vmax.f32 %v246_v35, %v247_v36 }
  0x2d   : > { %v288_v44 = vadd.f32 %v243_v43, %v242_v42  ;;  %v297_v49 = vadd.f32 %v249_v47, %v248_v46  ;;  %v250_v52 = vld [vmem:[%s2436_s28 + $0xf0] sm:$0xff]  ;;  %v251_v53 = vld [vmem:[%s2436_s28 + $0xf8] sm:$0xff]  ;;  %v353_v60 = vmax.f32 %v242_v42, %v243_v43  ;;  %v362_v63 = vmax.f32 %v248_v46, %v249_v47  ;;  %v2479_v3 = vld [vmem:[%s3352_s1] sm:$0x1f] }
  0x2e   : > { %274 = vadd.xlane.f32.xlu1 %v273_v16  ;;  %v300_v54 = vadd.f32 %v251_v53, %v250_v52  ;;  %v365_v62 = vmax.f32 %v250_v52, %v251_v53  ;;  %v371_v4 = vrot.slane %v2479_v3, %v2474_v2  ;;  %v579_v6 = vrot.slane %v2479_v3, %v2484_v5 }
  0x2f   : > { %262 = vadd.xlane.f32.xlu0 %v261_v17 }
  0x32   : > { %283 = vadd.xlane.f32.xlu1 %v282_v24 }
  0x33   : > { %280 = vadd.xlane.f32.xlu0 %v279_v27 }
  0x36   : > { %277 = vadd.xlane.f32.xlu1 %v276_v30 }
  0x37   : > { %265 = vadd.xlane.f32.xlu0 %v264_v33 }
  0x3a   : > { %292 = vadd.xlane.f32.xlu1 %v291_v34 }
  0x3b   : > { %286 = vadd.xlane.f32.xlu0 %v285_v37 }
  0x3e   : > { %321 = vmax.xlane.f32.xlu1 %v320_v38 }
  0x3f   : > { %295 = vadd.xlane.f32.xlu0 %v294_v39 }
  0x42   : > { %333 = vmax.xlane.f32.xlu1 %v332_v40 }
  0x43   : > { %324 = vmax.xlane.f32.xlu0 %v323_v41 }
  0x46   : > { %289 = vadd.xlane.f32.xlu1 %v288_v44 }
  0x47   : > { %336 = vmax.xlane.f32.xlu0 %v335_v45 }
  0x4a   : > { %327 = vmax.xlane.f32.xlu1 %v326_v48 }
  0x4b   : > { %298 = vadd.xlane.f32.xlu0 %v297_v49 }
  0x4e   : > { %345 = vmax.xlane.f32.xlu1 %v344_v50 }
  0x4f   : > { %339 = vmax.xlane.f32.xlu0 %v338_v51 }
  0x52   : > { %301 = vadd.xlane.f32.xlu1 %v300_v54 }
  0x53   : > { %348 = vmax.xlane.f32.xlu0 %v347_v55 }
  0x56   : > { %342 = vmax.xlane.f32.xlu1 %v341_v56 }
  0x57   : > { %330 = vmax.xlane.f32.xlu0 %v329_v57 }
  0x5a   : > { %357 = vmax.xlane.f32.xlu1 %v356_v58 }
  0x5b   : > { %351 = vmax.xlane.f32.xlu0 %v350_v59 }
  0x5e   : > { %354 = vmax.xlane.f32.xlu1 %v353_v60 }
  0x5f   : > { %360 = vmax.xlane.f32.xlu0 %v359_v61 }
  0x62   : > { %366 = vmax.xlane.f32.xlu1 %v365_v62 }
  0x63   : > { %363 = vmax.xlane.f32.xlu0 %v362_v63 }
  0x73   : > { %378 = vbcast.lane.b32.xlu1 %v371_v4, 264 }
  0x77   : > { %582 = vbcast.lane.b32.xlu1 %v579_v6, 256 }
  0x79   : > { %374 = vbcast.lane.b32.xlu0 %v371_v4, 256 }
  0x7b   : > { %586 = vbcast.lane.b32.xlu1 %v579_v6, 264 }
  0x7d   : > { %382 = vbcast.lane.b32.xlu0 %v371_v4, 272 }
  0x7f   : > { %590 = vbcast.lane.b32.xlu1 %v579_v6, 272 }
  0x81   : > { %386 = vbcast.lane.b32.xlu0 %v371_v4, 280 }
  0x83   : > { %594 = vbcast.lane.b32.xlu1 %v579_v6, 280 }
  0xb3   : > { %v2488_v8 = vpop.xlane.xlu1 %268 }
  0xb4   : > { %v2490_v9 = vpop.xlane.xlu0 %256 }
  0xb5   : > { %v304_v7 = vmul.f32 0.00390625, %v2490_v9 }
  0xb7   : > { %v2492_v10 = vpop.xlane.xlu1 %271 }
  0xb8   : > { %v2494_v11 = vpop.xlane.xlu0 %259 }
  0xbb   : > { %v2496_v12 = vpop.xlane.xlu1 %274 }
  0xbc   : > { %v2498_v13 = vpop.xlane.xlu0 %262 }
  0xbf   : > { %v2500_v14 = vpop.xlane.xlu1 %283 }
  0xc0   : > { %v2502_v15 = vpop.xlane.xlu0 %280 }
  0xc3   : > { %v2504_v16 = vpop.xlane.xlu1 %277 }
  0xc4   : > { %v2506_v17 = vpop.xlane.xlu0 %265 }
  0xc7   : > { %v2508_v18 = vpop.xlane.xlu1 %292 }
  0xc8   : > { %v2510_v19 = vpop.xlane.xlu0 %286 }
  0xcb   : > { %v322_v20 = vpop.xlane.xlu1 %321 }
  0xcc   : > { %v2512_v21 = vpop.xlane.xlu0 %295 }
  0xcf   : > { %v334_v22 = vpop.xlane.xlu1 %333 }
  0xd0   : > { %v325_v23 = vpop.xlane.xlu0 %324 }
  0xd3   : > { %v2514_v24 = vpop.xlane.xlu1 %289 }
  0xd4   : > { %v337_v25 = vpop.xlane.xlu0 %336 }
  0xd7   : > { %v328_v26 = vpop.xlane.xlu1 %327 }
  0xd8   : > { %v2516_v27 = vpop.xlane.xlu0 %298 }
  0xdb   : > { %v2518_v28 = vpop.xlane.xlu1 %345 }
  0xdc   : > { %v340_v29 = vpop.xlane.xlu0 %339 }
  0xdf   : > { %v2520_v30 = vpop.xlane.xlu1 %301 }
  0xe0   : > { %v2522_v31 = vpop.xlane.xlu0 %348 }
  0xe3   : > { %v2524_v32 = vpop.xlane.xlu1 %342 }
  0xe4   : > { %v2526_v33 = vpop.xlane.xlu0 %330 }
  0xe7   : > { %v2528_v34 = vpop.xlane.xlu1 %357 }
  0xe8   : > { %v352_v35 = vpop.xlane.xlu0 %351 }
  0xeb   : > { %v2530_v36 = vpop.xlane.xlu1 %354 }
  0xec   : > { %v361_v37 = vpop.xlane.xlu0 %360 }
  0xef   : > { %v2532_v38 = vpop.xlane.xlu1 %366 }
  0xf0   : > { %v364_v39 = vpop.xlane.xlu0 %363 }
  0xf3   : > { %v2534_v40 = vpop.permute.xlu1 %378 }
  0xf4   : > { %v2536_v41 = vpop.permute.xlu0 %374  ;;  %v773_v42 = vmul.f32 %v2534_v40, %v325_v23  ;;  %v2543_v45 = vmul.f32 %v2534_v40, %v361_v37  ;;  %v777_v47 = vmul.f32 %v2534_v40, %v337_v25  ;;  %v781_v62 = vmul.f32 %v2534_v40, %v2522_v31 }
  0xf5   : > { %v772_v43 = vmul.f32 %v2536_v41, %v322_v20  ;;  %v776_v48 = vmul.f32 %v2536_v41, %v334_v22  ;;  %v780_v63 = vmul.f32 %v2536_v41, %v2518_v28 }
  0xf6   : > { %808 = vperm.xlu0 %2203, %v773_v42  }
  0xf7   : > { %805 = vperm.xlu1 %2202, %v772_v43   ;;  %v2540_v44 = vpop.permute.xlu1 %582 }
  0xf8   : > { %v2545_v46 = vpop.permute.xlu0 %382  ;;  %v939_v53 = vmul.f32 %v2540_v44, %v322_v20  ;;  %v943_v57 = vmul.f32 %v2540_v44, %v334_v22  ;;  %v305_v20 = vmul.f32 0.00390625, %v2494_v11  ;;  %v392_v22 = vmul.f32 %v2536_v41, %v304_v7 }
  0xf9   : > { %v2552_v50 = vmul.f32 %v2545_v46, %v352_v35  ;;  %v2555_v51 = vmul.f32 %v2545_v46, %v364_v39  ;;  %v778_v60 = vmul.f32 %v2545_v46, %v340_v29  ;;  %v774_v61 = vmul.f32 %v2545_v46, %v328_v26 }
  0xfa   : > { %820 = vperm.xlu0 %2203, %v777_v47   ;;  %v600_v11 = vmul.f32 %v2540_v44, %v304_v7  ;;  %v313_v47 = vmul.f32 0.00390625, %v2500_v14 }
  0xfb   : > { %817 = vperm.xlu1 %2202, %v776_v48   ;;  %v2549_v49 = vpop.permute.xlu1 %586  ;;  %v312_v48 = vmul.f32 0.00390625, %v2502_v15 }
  0xfc   : > { %v940_v52 = vmul.f32 %v2549_v49, %v325_v23  ;;  %v2560_v54 = vmul.f32 %v2549_v49, %v361_v37  ;;  %v944_v56 = vmul.f32 %v2549_v49, %v337_v25  ;;  %v393_v23 = vmul.f32 %v2534_v40, %v305_v20 }
  0xfd   : > { %v309_v25 = vmul.f32 0.00390625, %v2492_v10  ;;  %v601_v9 = vmul.f32 %v2549_v49, %v305_v20  ;;  %v608_v14 = vmul.f32 %v2540_v44, %v312_v48  ;;  %v948_v15 = vmul.f32 %v2549_v49, %v2522_v31 }
  0xfe   : > { %975 = vperm.xlu0 %2203, %v940_v52   ;;  %v401_v52 = vmul.f32 %v2534_v40, %v313_v47  ;;  %v314_v31 = vmul.f32 0.00390625, %v2510_v19 }
  0xff   : > { %972 = vperm.xlu1 %2202, %v939_v53   ;;  %v2562_v55 = vpop.permute.xlu1 %590  ;;  %v605_v37 = vmul.f32 %v2549_v49, %v309_v25  ;;  %v400_v53 = vmul.f32 %v2536_v41, %v312_v48 }
 0x100   : > { %v2567_v58 = vmul.f32 %v2562_v55, %v352_v35  ;;  %v2570_v59 = vmul.f32 %v2562_v55, %v364_v39  ;;  %v945_v4 = vmul.f32 %v2562_v55, %v340_v29  ;;  %v941_v6 = vmul.f32 %v2562_v55, %v328_v26 }
 0x101   : > { %v308_v35 = vmul.f32 0.00390625, %v2488_v8  ;;  %v397_v29 = vmul.f32 %v2534_v40, %v309_v25  ;;  %v310_v39 = vmul.f32 0.00390625, %v2496_v12  ;;  %v306_v8 = vmul.f32 0.00390625, %v2498_v13 }
 0x102   : > { %987 = vperm.xlu0 %2203, %v944_v56   ;;  %v609_v56 = vmul.f32 %v2549_v49, %v313_v47 }
 0x103   : > { %984 = vperm.xlu1 %2202, %v943_v57   ;;  %v396_v26 = vmul.f32 %v2536_v41, %v308_v35  ;;  %v604_v10 = vmul.f32 %v2540_v44, %v308_v35  ;;  %v398_v42 = vmul.f32 %v2545_v46, %v310_v39  ;;  %v394_v43 = vmul.f32 %v2545_v46, %v306_v8  ;;  %v2606_v57 = vpop.permute.xlu0 %386  ;;  %v595_v20 = vpop.permute.xlu1 %594 }
 0x104   : > { %v606_v12 = vmul.f32 %v2562_v55, %v310_v39  ;;  %v602_v13 = vmul.f32 %v2562_v55, %v306_v8  ;;  %v775_v35 = vmul.f32 %v2606_v57, %v2526_v33 }
 0x106   : > { %823 = vperm.xlu0 %2203, %v778_v60   ;;  %v947_v60 = vmul.f32 %v2540_v44, %v2518_v28  ;;  %v402_v28 = vmul.f32 %v2545_v46, %v314_v31 }
 0x107   : > { %811 = vperm.xlu1 %2202, %v774_v61   ;;  %v311_v61 = vmul.f32 0.00390625, %v2504_v16  ;;  %v317_v16 = vmul.f32 0.00390625, %v2512_v21  ;;  %v779_v21 = vmul.f32 %v2606_v57, %v2524_v32 }
 0x109   : > { %v613_v19 = vmul.f32 %v2549_v49, %v317_v16  ;;  %v942_v49 = vmul.f32 %v595_v20, %v2526_v33 }
 0x10a   : > { %832 = vperm.xlu0 %2203, %v781_v62   ;;  %v307_v62 = vmul.f32 0.00390625, %v2506_v17 }
 0x10b   : > { %829 = vperm.xlu1 %2202, %v780_v63   ;;  %v399_v63 = vmul.f32 %v2606_v57, %v311_v61 }
 0x10c   : > { %v603_v17 = vmul.f32 %v595_v20, %v307_v62 }
 0x10e   : > { %990 = vperm.xlu0 %2203, %v945_v4   ;;  %v395_v4 = vmul.f32 %v2606_v57, %v307_v62 }
 0x10f   : > { %978 = vperm.xlu1 %2202, %v941_v6   ;;  %v316_v6 = vmul.f32 0.00390625, %v2508_v18  ;;  %v610_v18 = vmul.f32 %v2562_v55, %v314_v31 }
 0x111   : > { %v404_v7 = vmul.f32 %v2536_v41, %v316_v6  ;;  %v612_v25 = vmul.f32 %v2540_v44, %v316_v6 }
 0x112   : > { %425 = vperm.xlu0 %2203, %v392_v22   ;;  %v405_v22 = vmul.f32 %v2534_v40, %v317_v16  ;;  %v784_v40 = vmul.f32 %v2536_v41, %v2528_v34  ;;  %v315_v41 = vmul.f32 0.00390625, %v2514_v24  ;;  %v950_v24 = vmul.f32 %v595_v20, %v2530_v36 }
 0x113   : > { %428 = vperm.xlu1 %2202, %v393_v23   ;;  %v607_v23 = vmul.f32 %v595_v20, %v311_v61 }
 0x116   : > { %440 = vperm.xlu0 %2203, %v397_v29   ;;  %v946_v29 = vmul.f32 %v595_v20, %v2524_v32 }
 0x117   : > { %437 = vperm.xlu1 %2202, %v396_v26   ;;  %v951_v26 = vmul.f32 %v2540_v44, %v2528_v34  ;;  %v783_v34 = vmul.f32 %v2606_v57, %v2530_v36  ;;  %v319_v44 = vmul.f32 0.00390625, %v2520_v30  ;;  %v787_v36 = vmul.f32 %v2606_v57, %v2532_v38 }
 0x11a   : > { %636 = vperm.xlu0 %2203, %v601_v9   ;;  %v318_v9 = vmul.f32 0.00390625, %v2516_v27  ;;  %v2647_v27 = vand.u32 127, %v368_v0 }
 0x11b   : > { %633 = vperm.xlu1 %2202, %v600_v11  }
 0x11c   : > { %v406_v33 = vmul.f32 %v2545_v46, %v318_v9  ;;  %v614_v32 = vmul.f32 %v2562_v55, %v318_v9  ;;  %v615_v46 = vmul.f32 %v595_v20, %v319_v44  ;;  %v478_v55 = vadd.s32 4294967288, %v2647_v27 }
 0x11d   : > { %v2661_v30 = vsub.s32 %v2647_v27, %v2471_v1 }
 0x11e   : > { %648 = vperm.xlu0 %2203, %v605_v37   ;;  %v2657_v0 = vsub.s32 %v478_v55, %v2471_v1 }
 0x11f   : > { %645 = vperm.xlu1 %2202, %v604_v10  }
 0x122   : > { %443 = vperm.xlu0 %2203, %v398_v42  }
 0x123   : > { %431 = vperm.xlu1 %2202, %v394_v43  }
 0x126   : > { %452 = vperm.xlu0 %2203, %v401_v52  }
 0x127   : > { %449 = vperm.xlu1 %2202, %v400_v53   ;;  %v485_v53 = vadd.s32 4294967280, %v2647_v27 }
 0x12a   : > { %651 = vperm.xlu0 %2203, %v606_v12  }
 0x12b   : > { %639 = vperm.xlu1 %2202, %v602_v13  }
 0x12e   : > { %660 = vperm.xlu0 %2203, %v609_v56  }
 0x12f   : > { %657 = vperm.xlu1 %2202, %v608_v14  }
 0x132   : > { %999 = vperm.xlu0 %2203, %v948_v15  }
 0x133   : > { %996 = vperm.xlu1 %2202, %v947_v60  }
 0x136   : > { %446 = vperm.xlu0 %2203, %v399_v63  }
 0x137   : > { %434 = vperm.xlu1 %2202, %v395_v4  }
 0x13a   : > { %461 = vperm.xlu0 %2203, %v404_v7  }
 0x13b   : > { %455 = vperm.xlu1 %2202, %v402_v28  }
 0x13e   : > { %642 = vperm.xlu0 %2203, %v603_v17  }
 0x13f   : > { %464 = vperm.xlu1 %2202, %v405_v22  }
 0x142   : > { %663 = vperm.xlu0 %2203, %v610_v18  }
 0x143   : > { %654 = vperm.xlu1 %2202, %v607_v23  }
 0x146   : > { %672 = vperm.xlu0 %2203, %v613_v19  }
 0x147   : > { %669 = vperm.xlu1 %2202, %v612_v25  }
 0x14a   : > { %826 = vperm.xlu0 %2203, %v779_v21  }
 0x14b   : > { %814 = vperm.xlu1 %2202, %v775_v35  }
 0x14e   : > { %841 = vperm.xlu0 %2203, %v784_v40  }
 0x14f   : > { %835 = vperm.xlu1 %2202, %v2552_v50   ;;  %v403_v50 = vmul.f32 %v2606_v57, %v315_v41 }
 0x152   : > { %981 = vperm.xlu0 %2203, %v942_v49  }
 0x153   : > { %844 = vperm.xlu1 %2202, %v2543_v45   ;;  %v611_v45 = vmul.f32 %v595_v20, %v315_v41 }
 0x156   : > { %1002 = vperm.xlu0 %2203, %v2567_v58  }
 0x157   : > { %993 = vperm.xlu1 %2202, %v946_v29  }
 0x15a   : > { %1011 = vperm.xlu0 %2203, %v2560_v54   ;;  %v407_v54 = vmul.f32 %v2606_v57, %v319_v44  ;;  %v2675_v57 = vsub.s32 %v485_v53, %v2471_v1 }
 0x15b   : > { %1008 = vperm.xlu1 %2202, %v951_v26  }
 0x15e   : > { %467 = vperm.xlu0 %2203, %v406_v33  }
 0x15f   : > { %458 = vperm.xlu1 %2202, %v403_v50  }
 0x162   : > { %675 = vperm.xlu0 %2203, %v614_v32  }
 0x163   : > { %666 = vperm.xlu1 %2202, %v611_v45  }
 0x166   : > { %847 = vperm.xlu0 %2203, %v2555_v51   ;;  %v954_v51 = vmul.f32 %v595_v20, %v2532_v38 }
 0x167   : > { %838 = vperm.xlu1 %2202, %v783_v34  }
 0x16a   : > { %1014 = vperm.xlu0 %2203, %v2570_v59  }
 0x16b   : > { %1005 = vperm.xlu1 %2202, %v950_v24  }
 0x16e   : > { %678 = vperm.xlu0 %2203, %v615_v46  }
 0x16f   : > { %470 = vperm.xlu1 %2202, %v407_v54  }
 0x172   : > { %1017 = vperm.xlu0 %2203, %v954_v51  }
 0x173   : > { %850 = vperm.xlu1 %2202, %v787_v36  }
 0x175   : > { %v809_v58 = vpop.permute.xlu0 %808 }
 0x176   : > { %v806_v59 = vpop.permute.xlu1 %805  ;;  %v859_v11 = vrot.slane %v809_v58, %v2657_v0 }
 0x177   : > { %v855_v37 = vrot.slane %v806_v59, %v2661_v30 }
 0x179   : > { %v860_v10 = vsel %vm483_vm0, %v859_v11, %v855_v37  ;;  %v821_v39 = vpop.permute.xlu0 %820 }
 0x17a   : > { %v818_v38 = vpop.permute.xlu1 %817  ;;  %v878_v8 = vrot.slane %v821_v39, %v2657_v0 }
 0x17b   : > { %v874_v42 = vrot.slane %v818_v38, %v2661_v30 }
 0x17d   : > { %v879_v43 = vsel %vm483_vm0, %v878_v8, %v874_v42  ;;  %v976_v47 = vpop.permute.xlu0 %975 }
 0x17e   : > { %v973_v48 = vpop.permute.xlu1 %972  ;;  %v1026_v52 = vrot.slane %v976_v47, %v2657_v0 }
 0x17f   : > { %v1022_v12 = vrot.slane %v973_v48, %v2661_v30 }
 0x181   : > { %v1027_v13 = vsel %vm483_vm0, %v1026_v52, %v1022_v12  ;;  %v988_v56 = vpop.permute.xlu0 %987 }
 0x182   : > { %v985_v14 = vpop.permute.xlu1 %984  ;;  %v1045_v15 = vrot.slane %v988_v56, %v2657_v0 }
 0x183   : > { %v1041_v60 = vrot.slane %v985_v14, %v2661_v30 }
 0x185   : > { %v1046_v61 = vsel %vm483_vm0, %v1045_v15, %v1041_v60  ;;  %v824_v62 = vpop.permute.xlu0 %823 }
 0x186   : > { %v812_v63 = vpop.permute.xlu1 %811  ;;  %v883_v4 = vrot.slane %v824_v62, %v2675_v57 }
 0x187   : > { %v864_v6 = vrot.slane %v812_v63, %v2675_v57  ;;  %v492_v63 = vadd.s32 4294967272, %v2647_v27 }
 0x188   : > { %v2682_v31 = vsel %vm490_vm1, %v883_v4, %v879_v43 }
 0x189   : > { %v2685_v7 = vsel %vm490_vm1, %v864_v6, %v860_v10  ;;  %v833_v20 = vpop.permute.xlu0 %832 }
 0x18a   : > { %v830_v28 = vpop.permute.xlu1 %829  ;;  %v897_v16 = vrot.slane %v833_v20, %v2657_v0 }
 0x18b   : > { %v893_v17 = vrot.slane %v830_v28, %v2661_v30 }
 0x18d   : > { %v2690_v22 = vsel %vm483_vm0, %v897_v16, %v893_v17  ;;  %v991_v18 = vpop.permute.xlu0 %990  ;;  %v2729_v17 = vsub.s32 %v492_v63, %v2471_v1 }
 0x18e   : > { %v979_v23 = vpop.permute.xlu1 %978  ;;  %v1050_v19 = vrot.slane %v991_v18, %v2675_v57 }
 0x18f   : > { %v1031_v25 = vrot.slane %v979_v23, %v2675_v57 }
 0x190   : > { %v2695_v21 = vsel %vm490_vm1, %v1050_v19, %v1046_v61 }
 0x191   : > { %v2698_v35 = vsel %vm490_vm1, %v1031_v25, %v1027_v13  ;;  %v426_v40 = vpop.permute.xlu0 %425 }
 0x192   : > { %v429_v49 = vpop.permute.xlu1 %428  ;;  %v477_v29 = vrot.slane %v426_v40, %v2661_v30 }
 0x193   : > { %v482_v26 = vrot.slane %v429_v49, %v2657_v0 }
 0x195   : > { %v484_v9 = vsel %vm483_vm0, %v482_v26, %v477_v29  ;;  %v441_v41 = vpop.permute.xlu0 %440 }
 0x196   : > { %v438_v33 = vpop.permute.xlu1 %437  ;;  %v506_v50 = vrot.slane %v441_v41, %v2657_v0 }
 0x197   : > { %v502_v32 = vrot.slane %v438_v33, %v2661_v30 }
 0x199   : > { %v507_v45 = vsel %vm483_vm0, %v506_v50, %v502_v32  ;;  %v637_v34 = vpop.permute.xlu0 %636 }
 0x19a   : > { %v634_v24 = vpop.permute.xlu1 %633  ;;  %v687_v44 = vrot.slane %v637_v34, %v2657_v0 }
 0x19b   : > { %v683_v46 = vrot.slane %v634_v24, %v2661_v30 }
 0x19d   : > { %v688_v54 = vsel %vm483_vm0, %v687_v44, %v683_v46  ;;  %v649_v55 = vpop.permute.xlu0 %648 }
 0x19e   : > { %v646_v51 = vpop.permute.xlu1 %645  ;;  %v706_v36 = vrot.slane %v649_v55, %v2657_v0 }
 0x19f   : > { %v702_v58 = vrot.slane %v646_v51, %v2661_v30 }
 0x1a1   : > { %v707_v59 = vsel %vm483_vm0, %v706_v36, %v702_v58  ;;  %v444_v11 = vpop.permute.xlu0 %443 }
 0x1a2   : > { %v432_v37 = vpop.permute.xlu1 %431  ;;  %v511_v10 = vrot.slane %v444_v11, %v2675_v57 }
 0x1a3   : > { %v489_v39 = vrot.slane %v432_v37, %v2675_v57 }
 0x1a4   : > { %v512_v38 = vsel %vm490_vm1, %v511_v10, %v507_v45 }
 0x1a5   : > { %v491_v8 = vsel %vm490_vm1, %v489_v39, %v484_v9  ;;  %v453_v42 = vpop.permute.xlu0 %452 }
 0x1a6   : > { %v450_v43 = vpop.permute.xlu1 %449  ;;  %v525_v47 = vrot.slane %v453_v42, %v2657_v0 }
 0x1a7   : > { %v521_v48 = vrot.slane %v450_v43, %v2661_v30 }
 0x1a9   : > { %v526_v52 = vsel %vm483_vm0, %v525_v47, %v521_v48  ;;  %v652_v53 = vpop.permute.xlu0 %651 }
 0x1aa   : > { %v640_v12 = vpop.permute.xlu1 %639  ;;  %v711_v13 = vrot.slane %v652_v53, %v2675_v57 }
 0x1ab   : > { %v692_v56 = vrot.slane %v640_v12, %v2675_v57 }
 0x1ac   : > { %v712_v14 = vsel %vm490_vm1, %v711_v13, %v707_v59 }
 0x1ad   : > { %v693_v15 = vsel %vm490_vm1, %v692_v56, %v688_v54  ;;  %v661_v60 = vpop.permute.xlu0 %660 }
 0x1ae   : > { %v658_v61 = vpop.permute.xlu1 %657  ;;  %v725_v62 = vrot.slane %v661_v60, %v2657_v0 }
 0x1af   : > { %v721_v4 = vrot.slane %v658_v61, %v2661_v30 }
 0x1b1   : > { %v726_v6 = vsel %vm483_vm0, %v725_v62, %v721_v4  ;;  %v1000_v20 = vpop.permute.xlu0 %999 }
 0x1b2   : > { %v997_v28 = vpop.permute.xlu1 %996  ;;  %v1064_v16 = vrot.slane %v1000_v20, %v2657_v0 }
 0x1b3   : > { %v1060_v18 = vrot.slane %v997_v28, %v2661_v30 }
 0x1b5   : > { %v1065_v23 = vsel %vm483_vm0, %v1064_v16, %v1060_v18  ;;  %v447_v19 = vpop.permute.xlu0 %446 }
 0x1b6   : > { %v435_v25 = vpop.permute.xlu1 %434  ;;  %v516_v27 = vrot.slane %v447_v19, %v2729_v17 }
 0x1b7   : > { %v496_v40 = vrot.slane %v435_v25, %v2729_v17 }
 0x1b8   : > { %v517_v49 = vsel %vm497_vm2, %v516_v27, %v512_v38 }
 0x1b9   : > { %v498_v29 = vsel %vm497_vm2, %v496_v40, %v491_v8  ;;  %v2737_v26 = vpop.permute.xlu0 %461 }
 0x1ba   : > { %v456_v9 = vpop.permute.xlu1 %455  ;;  %v557_v41 = vsel %vm556_vm3, %v517_v49, %v498_v29 }
 0x1bb   : > { %v530_v33 = vrot.slane %v456_v9, %v2675_v57 }
 0x1bd   : > { %v531_v50 = vsel %vm490_vm1, %v530_v33, %v526_v52  ;;  %v643_v32 = vpop.permute.xlu0 %642 }
 0x1be   : > { %v2742_v45 = vpop.permute.xlu1 %464  ;;  %v697_v34 = vrot.slane %v643_v32, %v2729_v17 }
 0x1bf   : > { %v544_v29 = vrot.slane %v2742_v45, %v2657_v0 }
 0x1c0   : > { %v698_v24 = vsel %vm497_vm2, %v697_v34, %v693_v15 }
 0x1c1   : > { %v664_v44 = vpop.permute.xlu0 %663 }
 0x1c2   : > { %v655_v46 = vpop.permute.xlu1 %654  ;;  %v730_v54 = vrot.slane %v664_v44, %v2675_v57 }
 0x1c3   : > { %v716_v55 = vrot.slane %v655_v46, %v2729_v17 }
 0x1c4   : > { %v731_v51 = vsel %vm490_vm1, %v730_v54, %v726_v6 }
 0x1c5   : > { %v717_v36 = vsel %vm497_vm2, %v716_v55, %v712_v14  ;;  %v673_v58 = vpop.permute.xlu0 %672 }
 0x1c6   : > { %v670_v59 = vpop.permute.xlu1 %669  ;;  %v756_v11 = vsel %vm556_vm3, %v717_v36, %v698_v24  ;;  %v744_v33 = vrot.slane %v673_v58, %v2657_v0  ;;  %v540_v24 = vrot.slane %v2737_v26, %v2661_v30 }
 0x1c7   : > { %v740_v9 = vrot.slane %v670_v59, %v2661_v30 }
 0x1c8   : > { %v545_v45 = vsel %vm483_vm0, %v544_v29, %v540_v24 }
 0x1c9   : > { %v827_v37 = vpop.permute.xlu0 %826  ;;  %v745_v55 = vsel %vm483_vm0, %v744_v33, %v740_v9  ;;  %v763_v9 = vstv %s2107_s6  ;;  %v768_v33 = vsub.s32 3, %v2471_v1 }
 0x1ca   : > { %v815_v10 = vpop.permute.xlu1 %814  ;;  %v888_v39 = vrot.slane %v827_v37, %v2729_v17 }
 0x1cb   : > { %v869_v38 = vrot.slane %v815_v10, %v2729_v17 }
 0x1cc   : > { %v889_v8 = vsel %vm497_vm2, %v888_v39, %v2682_v31 }
 0x1cd   : > { %v870_v42 = vsel %vm497_vm2, %v869_v38, %v2685_v7  ;;  %v2757_v43 = vpop.permute.xlu0 %841 }
 0x1ce   : > { %v836_v47 = vpop.permute.xlu1 %835  ;;  %v928_v48 = vsel %vm556_vm3, %v889_v8, %v870_v42 }
 0x1cf   : > { %v902_v52 = vrot.slane %v836_v47, %v2675_v57 }
 0x1d1   : > { %v903_v53 = vsel %vm490_vm1, %v902_v52, %v2690_v22  ;;  %v982_v12 = vpop.permute.xlu0 %981  ;;  %v912_v52 = vrot.slane %v2757_v43, %v2661_v30 }
 0x1d2   : > { %v2763_v13 = vpop.permute.xlu1 %844  ;;  %v1036_v56 = vrot.slane %v982_v12, %v2729_v17 }
 0x1d3   : > { %v916_v10 = vrot.slane %v2763_v13, %v2657_v0 }
 0x1d4   : > { %v1037_v31 = vsel %vm497_vm2, %v1036_v56, %v2698_v35 }
 0x1d5   : > { %v1003_v14 = vpop.permute.xlu0 %1002 }
 0x1d6   : > { %v994_v7 = vpop.permute.xlu1 %993  ;;  %v1069_v15 = vrot.slane %v1003_v14, %v2675_v57 }
 0x1d7   : > { %v1055_v60 = vrot.slane %v994_v7, %v2729_v17 }
 0x1d8   : > { %v1070_v61 = vsel %vm490_vm1, %v1069_v15, %v1065_v23 }
 0x1d9   : > { %v1056_v62 = vsel %vm497_vm2, %v1055_v60, %v2695_v21  ;;  %v1012_v22 = vpop.permute.xlu0 %1011 }
 0x1da   : > { %v1009_v63 = vpop.permute.xlu1 %1008  ;;  %v1095_v4 = vsel %vm556_vm3, %v1056_v62, %v1037_v31  ;;  %v1083_v59 = vrot.slane %v1012_v22, %v2657_v0 }
 0x1db   : > { %v1079_v58 = vrot.slane %v1009_v63, %v2661_v30 }
 0x1dd   : > { %v468_v6 = vpop.permute.xlu0 %467  ;;  %v1084_v13 = vsel %vm483_vm0, %v1083_v59, %v1079_v58  ;;  %v1107_v59 = vmul.f32 2.0, %v2479_v3 }
 0x1de   : > { %v459_v20 = vpop.permute.xlu1 %458  ;;  %v549_v54 = vrot.slane %v468_v6, %v2675_v57  ;;  %v2204_v6 = vld [vmem:[%s3354_s3 + $0x4] ss:$8 sps:$4 sm:$0xff]  }
 0x1df   : > { %v535_v28 = vrot.slane %v459_v20, %v2729_v17  ;;  %v2206_v20 = vld [vmem:[%s3354_s3] ss:$8 sps:$4 sm:$0xff]   ;;  %1801 = vmatprep.subr.bf16.mxu1 %v2204_v6  ;;  %v2243_v6 = vld [vmem:[%s3354_s3 + $0x164] ss:$8 sps:$4 sm:$0xff]  }
 0x1e0   : > { %v550_v42 = vsel %vm490_vm1, %v549_v54, %v545_v45  ;;  %1802 = vmatpush1.bf16.msra.mxu1 %v2206_v20 }
 0x1e1   : > { %v536_v35 = vsel %vm497_vm2, %v535_v28, %v531_v50  ;;  %v676_v16 = vpop.permute.xlu0 %675  ;;  %v2207_v28 = vld [vmem:[%s3354_s3 + $0x104] ss:$8 sps:$4 sm:$0xff]  }
 0x1e2   : > { %v667_v18 = vpop.permute.xlu1 %666  ;;  %v559_v19 = vsel %vm558_vm4, %v536_v35, %v557_v41  ;;  %v749_v44 = vrot.slane %v676_v16, %v2675_v57  ;;  %v2209_v35 = vld [vmem:[%s3354_s3 + $0x100] ss:$8 sps:$4 sm:$0xff]   ;;  %v2210_v16 = vld [vmem:[%s3354_s3 + $0x14] ss:$8 sps:$4 sm:$0xff]   ;;  %1842 = vmatprep.subr.bf16.mxu0 %v2207_v28 }
 0x1e3   : > { %v735_v23 = vrot.slane %v667_v18, %v2729_v17  ;;  %v2213_v18 = vld [vmem:[%s3354_s3 + $0x114] ss:$8 sps:$4 sm:$0xff]   ;;  %1843 = vmatpush1.bf16.msra.mxu0 %v2209_v35  ;;  %1803 = vmatprep.subr.bf16.mxu1 %v2210_v16  ;;  %v2245_v35 = vld [vmem:[%s3354_s3 + $0x160] ss:$8 sps:$4 sm:$0xff]  }
 0x1e4   : > { %v750_v39 = vsel %vm490_vm1, %v749_v44, %v745_v55  ;;  %1844 = vmatprep.subr.bf16.mxu0 %v2213_v18  ;;  %v769_v44 = vrot.slane %v2479_v3, %v768_v33  ;;  %v2246_v16 = vld [vmem:[%s3354_s3 + $0x74] ss:$8 sps:$4 sm:$0xff]   ;;  %v2248_v18 = vld [vmem:[%s3354_s3 + $0x70] ss:$8 sps:$4 sm:$0xff]  }
 0x1e5   : > { %v736_v25 = vsel %vm497_vm2, %v735_v23, %v731_v51  ;;  %v848_v21 = vpop.permute.xlu0 %847  ;;  %v2215_v23 = vld [vmem:[%s3354_s3 + $0x110] ss:$8 sps:$4 sm:$0xff]  }
 0x1e6   : > { %v839_v27 = vpop.permute.xlu1 %838  ;;  %v757_v40 = vsel %vm558_vm4, %v736_v25, %v756_v11  ;;  %v921_v47 = vrot.slane %v848_v21, %v2675_v57  ;;  %v2216_v25 = vld [vmem:[%s3354_s3 + $0x24] ss:$8 sps:$4 sm:$0xff]  }
 0x1e7   : > { %v907_v49 = vrot.slane %v839_v27, %v2729_v17  ;;  %v2219_v21 = vld [vmem:[%s3354_s3 + $0x124] ss:$8 sps:$4 sm:$0xff]   ;;  %1845 = vmatpush1.bf16.msra.mxu0 %v2215_v23  ;;  %v2218_v27 = vld [vmem:[%s3354_s3 + $0x20] ss:$8 sps:$4 sm:$0xff]   ;;  %v2251_v23 = vld [vmem:[%s3354_s3 + $0x170] ss:$8 sps:$4 sm:$0xff]  }
 0x1e8   : > { %1846 = vmatprep.subr.bf16.mxu0 %v2219_v21  ;;  %v2254_v21 = vld [vmem:[%s3354_s3 + $0x80] ss:$8 sps:$4 sm:$0xff]  }
 0x1e9   : > { %v908_v50 = vsel %vm497_vm2, %v907_v49, %v903_v53  ;;  %v1015_v41 = vpop.permute.xlu0 %1014  ;;  %v567_v49 = vstv %s253_s5  ;;  %s3276_s5 = scalar_lea.vmem %s3355_s4, %s2175_s25 }
 0x1ea   : > { %v1006_v32 = vpop.permute.xlu1 %1005  ;;  %v929_v34 = vsel %vm558_vm4, %v908_v50, %v928_v48  ;;  %v1088_v38 = vrot.slane %v1015_v41, %v2675_v57  ;;  %v917_v57 = vsel %vm483_vm0, %v916_v10, %v912_v52  ;;  %v572_v41 = vsub.s32 2, %v2471_v1 }
 0x1eb   : > { %v1074_v46 = vrot.slane %v1006_v32, %v2729_v17  ;;  %v922_v43 = vsel %vm490_vm1, %v921_v47, %v917_v57  ;;  %v2228_v57 = vld [vmem:[%s3354_s3 + $0x44] ss:$8 sps:$4 sm:$0xff]  }
 0x1ec   : > { %v1089_v7 = vsel %vm490_vm1, %v1088_v38, %v1084_v13  ;;  %v573_v45 = vrot.slane %v2479_v3, %v572_v41  ;;  %v2221_v3 = vld [vmem:[%s3354_s3 + $0x120] ss:$8 sps:$4 sm:$0xff]   ;;  %v2222_v13 = vld [vmem:[%s3354_s3 + $0x34] ss:$8 sps:$4 sm:$0xff]  }
 0x1ed   : > { %v1075_v51 = vsel %vm497_vm2, %v1074_v46, %v1070_v61  ;;  %v679_v36 = vpop.permute.xlu0 %678  ;;  %1847 = vmatpush1.bf16.msra.mxu0 %v2221_v3 }
 0x1ee   : > { %v471_v11 = vpop.permute.xlu1 %470  ;;  %v754_v26 = vrot.slane %v679_v36, %v2729_v17  ;;  %v1096_v37 = vsel %vm558_vm4, %v1075_v51, %v1095_v4 }
 0x1ef   : > { %v554_v8 = vrot.slane %v471_v11, %v2729_v17  ;;  %v1110_v11 = vsub.s32 4, %v2471_v1 }
 0x1f0   : > { %v755_v48 = vsel %vm497_vm2, %v754_v26, %v750_v39 }
 0x1f1   : > { %v1018_v53 = vpop.permute.xlu0 %1017  ;;  %v555_v12 = vsel %vm497_vm2, %v554_v8, %v550_v42  ;;  %v758_v0 = vsel %vm560_vm5, %v755_v48, %v757_v40  ;;  %v1111_v8 = vrot.slane %v1107_v59, %v1110_v11  ;;  %v2282_v59 = vld [vmem:[%s3354_s3 + $0xd4] ss:$8 sps:$4 sm:$0xff]   ;;  %v2284_v11 = vld [vmem:[%s3354_s3 + $0xd0] ss:$8 sps:$4 sm:$0xff]  }
 0x1f2   : > { %v851_v56 = vpop.permute.xlu1 %850  ;;  %v1093_v31 = vrot.slane %v1018_v53, %v2729_v17  ;;  %v561_v14 = vsel %vm560_vm5, %v555_v12, %v559_v19  ;;  %v760_v4 = vsel %vm563_vm6, %v758_v0, 0.0  ;;  %v2212_v19 = vld [vmem:[%s3354_s3 + $0x10] ss:$8 sps:$4 sm:$0xff]  }
 0x1f3   : > { %v926_v15 = vrot.slane %v851_v56, %v2729_v17  ;;  %v564_v30 = vsel %vm563_vm6, %v561_v14, 0.0  ;;  %1804 = vmatpush1.bf16.msra.mxu1 %v2212_v19  ;;  %v2224_v56 = vld [vmem:[%s3354_s3 + $0x30] ss:$8 sps:$4 sm:$0xff]   ;;  %v2249_v19 = vld [vmem:[%s3354_s3 + $0x174] ss:$8 sps:$4 sm:$0xff]  }
 0x1f4   : > { %565 = vadd.xlane.f32.xlu1 %v564_v30  ;;  %v1094_v60 = vsel %vm497_vm2, %v1093_v31, %v1089_v7  ;;  %1805 = vmatprep.subr.bf16.mxu1 %v2216_v25  ;;  %v2225_v31 = vld [vmem:[%s3354_s3 + $0x134] ss:$8 sps:$4 sm:$0xff]   ;;  %v2227_v14 = vld [vmem:[%s3354_s3 + $0x130] ss:$8 sps:$4 sm:$0xff]   ;;  %v2230_v7 = vld [vmem:[%s3354_s3 + $0x40] ss:$8 sps:$4 sm:$0xff]  }
 0x1f5   : > { %v927_v61 = vsel %vm497_vm2, %v926_v15, %v922_v43  ;;  %v1097_v62 = vsel %vm560_vm5, %v1094_v60, %v1096_v37  ;;  %1848 = vmatprep.subr.bf16.mxu0 %v2225_v31  ;;  %v2231_v15 = vld [vmem:[%s3354_s3 + $0x144] ss:$8 sps:$4 sm:$0xff]   ;;  %v2233_v30 = vld [vmem:[%s3354_s3 + $0x140] ss:$8 sps:$4 sm:$0xff]   ;;  %v2234_v43 = vld [vmem:[%s3354_s3 + $0x54] ss:$8 sps:$4 sm:$0xff]  }
 0x1f6   : > { %v930_v22 = vsel %vm560_vm5, %v927_v61, %v929_v34  ;;  %v1099_v17 = vsel %vm563_vm6, %v1097_v62, 0.0  ;;  %1849 = vmatpush1.bf16.msra.mxu0 %v2227_v14  ;;  %v2236_v61 = vld [vmem:[%s3354_s3 + $0x50] ss:$8 sps:$4 sm:$0xff]   ;;  %v2237_v62 = vld [vmem:[%s3354_s3 + $0x154] ss:$8 sps:$4 sm:$0xff]  }
 0x1f7   : > { %v932_v63 = vsel %vm563_vm6, %v930_v22, 0.0  ;;  %1806 = vmatpush1.bf16.msra.mxu1 %v2218_v27  ;;  %1850 = vmatprep.subr.bf16.mxu0 %v2231_v15  ;;  %v2252_v25 = vld [vmem:[%s3354_s3 + $0x84] ss:$8 sps:$4 sm:$0xff]   ;;  %v2313_v31 = vld [vmem:[%s2436_s28 + $0x18] sm:$0xff] }
 0x1f8   : > { %933 = vadd.xlane.f32.xlu0 %v932_v63  ;;  %1807 = vmatprep.subr.bf16.mxu1 %v2222_v13  ;;  %v2239_v63 = vld [vmem:[%s3354_s3 + $0x150] ss:$8 sps:$4 sm:$0xff]   ;;  %v2314_v15 = vld [vmem:[%s2436_s28] sm:$0xff] }
 0x1f9   : > { %v2312_v13 = vld [vmem:[%s2436_s28 + $0x10] sm:$0xff] }
 0x1fa   : > { %1851 = vmatpush1.bf16.msra.mxu0 %v2233_v30 }
 0x1fb   : > { %1808 = vmatpush1.bf16.msra.mxu1 %v2224_v56  ;;  %1852 = vmatprep.subr.bf16.mxu0 %v2237_v62 }
 0x1fc   : > { %761 = vadd.xlane.f32.xlu0 %v760_v4  ;;  %1809 = vmatprep.subr.bf16.mxu1 %v2228_v57  ;;  %v2240_v4 = vld [vmem:[%s3354_s3 + $0x64] ss:$8 sps:$4 sm:$0xff]  }
 0x1fe   : > { %1853 = vmatpush1.bf16.msra.mxu0 %v2239_v63 }
 0x1ff   : > { %1810 = vmatpush1.bf16.msra.mxu1 %v2230_v7  ;;  %1854 = vmatprep.subr.bf16.mxu0 %v2243_v6  ;;  %v2319_v6 = vld [vmem:[%s2436_s28 + $0x48] sm:$0xff] }
 0x200   : > { %1100 = vadd.xlane.f32.xlu0 %v1099_v17  ;;  %1811 = vmatprep.subr.bf16.mxu1 %v2234_v43  ;;  %v2242_v17 = vld [vmem:[%s3354_s3 + $0x60] ss:$8 sps:$4 sm:$0xff]  }
 0x201   : > { %v2315_v43 = vld [vmem:[%s2436_s28 + $0x8] sm:$0xff] }
 0x202   : > { %1855 = vmatpush1.bf16.msra.mxu0 %v2245_v35 }
 0x203   : > { %1812 = vmatpush1.bf16.msra.mxu1 %v2236_v61  ;;  %1856 = vmatprep.subr.bf16.mxu0 %v2249_v19  ;;  %v2316_v61 = vld [vmem:[%s2436_s28 + $0x50] sm:$0xff] }
 0x204   : > { %1813 = vmatprep.subr.bf16.mxu1 %v2240_v4  ;;  %v2318_v4 = vld [vmem:[%s2436_s28 + $0x40] sm:$0xff] }
 0x206   : > { %1857 = vmatpush1.bf16.msra.mxu0 %v2251_v23 }
 0x207   : > { %1814 = vmatpush1.bf16.msra.mxu1 %v2242_v17 }
 0x208   : > { %1815 = vmatprep.subr.bf16.mxu1 %v2246_v16 }
 0x20b   : > { %1816 = vmatpush1.bf16.msra.mxu1 %v2248_v18 }
 0x20c   : > { %1817 = vmatprep.subr.bf16.mxu1 %v2252_v25 }
 0x20f   : > { %1818 = vmatpush1.bf16.msra.mxu1 %v2254_v21 }
 0x281   : > { %v566_v29 = vpop.xlane.xlu1 %565 }
 0x282   : > { %v568_v32 = vadd.f32 %v567_v49, %v566_v29  ;;  %v2258_v29 = vld [vmem:[%s3354_s3 + $0x94] ss:$8 sps:$4 sm:$0xff]  }
 0x283   : > { %1819 = vmatprep.subr.bf16.mxu1 %v2258_v29 }
 0x284   : > { %v569_v55 = vmax.f32 %v568_v32, 0.0  ;;  %v2266_v32 = vld [vmem:[%s3354_s3 + $0xa0] ss:$8 sps:$4 sm:$0xff]  }
 0x285   : > { %v934_v40 = vpop.xlane.xlu0 %933 }
 0x286   : > { %v935_v34 = vadd.f32 %v934_v40, %v567_v49  ;;  %v574_v37 = vmul.f32 %v573_v45, %v569_v55  ;;  %v2255_v40 = vld [vmem:[%s3354_s3 + $0x184] ss:$8 sps:$4 sm:$0xff]   ;;  %v2257_v49 = vld [vmem:[%s3354_s3 + $0x180] ss:$8 sps:$4 sm:$0xff]  }
 0x287   : > { %1858 = vmatprep.subr.bf16.mxu0 %v2255_v40  ;;  %v2276_v55 = vld [vmem:[%s3354_s3 + $0xc4] ss:$8 sps:$4 sm:$0xff]  }
 0x288   : > { %v936_v51 = vmax.f32 %v935_v34, 0.0  ;;  %1859 = vmatpush1.bf16.msra.mxu0 %v2257_v49  ;;  %v2267_v34 = vld [vmem:[%s3354_s3 + $0x1a4] ss:$8 sps:$4 sm:$0xff]   ;;  %v2320_v49 = vld [vmem:[%s2436_s28 + $0x90] sm:$0xff] }
 0x289   : > { %v762_v50 = vpop.xlane.xlu0 %761 }
 0x28a   : > { %v764_v24 = vadd.f32 %v763_v9, %v762_v50  ;;  %v937_v10 = vmul.f32 %v936_v51, %v573_v45  ;;  %v2263_v50 = vld [vmem:[%s3354_s3 + $0x190] ss:$8 sps:$4 sm:$0xff]   ;;  %v2278_v51 = vld [vmem:[%s3354_s3 + $0xc0] ss:$8 sps:$4 sm:$0xff]  }
 0x28b   : > { %v2275_v45 = vld [vmem:[%s3354_s3 + $0x1b0] ss:$8 sps:$4 sm:$0xff]  }
 0x28c   : > { %v765_v46 = vmax.f32 %v764_v24, 0.0  ;;  %v2269_v24 = vld [vmem:[%s3354_s3 + $0x1a0] ss:$8 sps:$4 sm:$0xff]  }
 0x28d   : > { %v1101_v54 = vpop.xlane.xlu0 %1100 }
 0x28e   : > { %v1102_v36 = vadd.f32 %v1101_v54, %v763_v9  ;;  %v770_v58 = vmul.f32 %v769_v44, %v765_v46  ;;  %v2260_v9 = vld [vmem:[%s3354_s3 + $0x90] ss:$8 sps:$4 sm:$0xff]   ;;  %v2273_v54 = vld [vmem:[%s3354_s3 + $0x1b4] ss:$8 sps:$4 sm:$0xff]  }
 0x28f   : > { %1820 = vmatpush1.bf16.msra.mxu1 %v2260_v9  ;;  %v2272_v46 = vld [vmem:[%s3354_s3 + $0xb0] ss:$8 sps:$4 sm:$0xff]  }
 0x290   : > { %v1103_v26 = vmax.f32 %v1102_v36, 0.0  ;;  %v771_v38 = vadd.f32 %v770_v58, %v574_v37  ;;  %v2279_v36 = vld [vmem:[%s3354_s3 + $0x1c4] ss:$8 sps:$4 sm:$0xff]   ;;  %v2281_v58 = vld [vmem:[%s3354_s3 + $0x1c0] ss:$8 sps:$4 sm:$0xff]   ;;  %v2321_v9 = vld [vmem:[%s2436_s28 + $0x98] sm:$0xff] }
 0x291   : > { %v2287_v37 = vld [vmem:[%s3354_s3 + $0x1d0] ss:$8 sps:$4 sm:$0xff]  }
 0x292   : > { %v1104_v39 = vmul.f32 %v1103_v26, %v769_v44  ;;  %v2270_v44 = vld [vmem:[%s3354_s3 + $0xb4] ss:$8 sps:$4 sm:$0xff]  }
 0x293   : > { %v2285_v26 = vld [vmem:[%s3354_s3 + $0x1d4] ss:$8 sps:$4 sm:$0xff]  }
 0x294   : > { %v1105_v42 = vadd.f32 %v1104_v39, %v937_v10  ;;  %v2288_v10 = vld [vmem:[%s3354_s3 + $0xe4] ss:$8 sps:$4 sm:$0xff]   ;;  %v2290_v39 = vld [vmem:[%s3354_s3 + $0xe0] ss:$8 sps:$4 sm:$0xff]  }
 0x296   : > { %v1106_v47 = vadd.f32 %v1105_v42, %v771_v38  ;;  %v2291_v38 = vld [vmem:[%s3354_s3 + $0x1e4] ss:$8 sps:$4 sm:$0xff]   ;;  %v2293_v42 = vld [vmem:[%s3354_s3 + $0x1e0] ss:$8 sps:$4 sm:$0xff]  }
 0x298   : > { %v1112_v48 = vadd.f32 %v1111_v8, %v1106_v47  ;;  %v2294_v8 = vld [vmem:[%s3354_s3 + $0xf4] ss:$8 sps:$4 sm:$0xff]  }
 0x299   : > { %v2297_v47 = vld [vmem:[%s3354_s3 + $0x1f4] ss:$8 sps:$4 sm:$0xff]  }
 0x29a   : > { %v1113_v52 = vsub.f32 0.0, %v1112_v48  ;;  %v2296_v48 = vld [vmem:[%s3354_s3 + $0xf0] ss:$8 sps:$4 sm:$0xff]  }
 0x29c   : > { %v1114_v53 = vmul.f32 1.442695, %v1113_v52  ;;  %v2299_v52 = vld [vmem:[%s3354_s3 + $0x1f0] ss:$8 sps:$4 sm:$0xff]  }
 0x29e   : > { %2300 = vpow2.f32 %v1114_v53 }
 0x2a8   : > { %v2301_v12 = vpop.eup %2300 }
 0x2a9   : > { %v1116_v0 = vadd.f32 1.0, %v2301_v12 }
 0x2ab   : > { %2302 = vrcp.f32 %v1116_v0 }
 0x2b5   : > { %v2303_v60 = vpop.eup %2302 }
 0x2b6   : > { %v1121_v22 = vrot.slane %v2303_v60, %v2474_v2  ;;  %v2916_v20 = vrot.slane %v2303_v60, %v572_v41  ;;  %v1140_v28 = vrot.slane %v2303_v60, %v2484_v5  ;;  %v1178_v27 = vrot.slane %v2303_v60, %v768_v33  ;;  %v2261_v33 = vld [vmem:[%s3354_s3 + $0x194] ss:$8 sps:$4 sm:$0xff]   ;;  %v2264_v41 = vld [vmem:[%s3354_s3 + $0xa4] ss:$8 sps:$4 sm:$0xff]  }
 0x2b7   : > { %1860 = vmatprep.subr.bf16.mxu0 %v2261_v33  ;;  %1821 = vmatprep.subr.bf16.mxu1 %v2264_v41 }
 0x2b8   : > { %1127 = vbcast.lane.b32.xlu0 %v1121_v22, 264  ;;  %1123 = vbcast.lane.b32.xlu1 %v1121_v22, 256 }
 0x2b9   : > { %1861 = vmatpush1.bf16.msra.mxu0 %v2263_v50  ;;  %1822 = vmatpush1.bf16.msra.mxu1 %v2266_v32  ;;  %v2322_v50 = vld [vmem:[%s2436_s28 + $0x60] sm:$0xff]  ;;  %v2323_v32 = vld [vmem:[%s2436_s28 + $0x68] sm:$0xff] }
 0x2ba   : > { %1862 = vmatprep.subr.bf16.mxu0 %v2267_v34  ;;  %1823 = vmatprep.subr.bf16.mxu1 %v2270_v44 }
 0x2bc   : > { %1165 = vbcast.lane.b32.xlu0 %v2916_v20, 264  ;;  %1142 = vbcast.lane.b32.xlu1 %v1140_v28, 256 }
 0x2bd   : > { %1863 = vmatpush1.bf16.msra.mxu0 %v2269_v24  ;;  %1824 = vmatpush1.bf16.msra.mxu1 %v2272_v46  ;;  %v2324_v24 = vld [vmem:[%s2436_s28 + $0xd0] sm:$0xff]  ;;  %v2325_v46 = vld [vmem:[%s2436_s28 + $0xd8] sm:$0xff] }
 0x2be   : > { %1864 = vmatprep.subr.bf16.mxu0 %v2273_v54  ;;  %1825 = vmatprep.subr.bf16.mxu1 %v2276_v55 }
 0x2c0   : > { %1150 = vbcast.lane.b32.xlu0 %v1140_v28, 272  ;;  %1146 = vbcast.lane.b32.xlu1 %v1140_v28, 264 }
 0x2c1   : > { %1865 = vmatpush1.bf16.msra.mxu0 %v2275_v45  ;;  %1826 = vmatpush1.bf16.msra.mxu1 %v2278_v51  ;;  %v2326_v45 = vld [vmem:[%s2436_s28 + $0x80] sm:$0xff]  ;;  %v2327_v51 = vld [vmem:[%s2436_s28 + $0x88] sm:$0xff] }
 0x2c2   : > { %1866 = vmatprep.subr.bf16.mxu0 %v2279_v36  ;;  %1827 = vmatprep.subr.bf16.mxu1 %v2282_v59 }
 0x2c4   : > { %1184 = vbcast.lane.b32.xlu0 %v1178_v27, 264  ;;  %1161 = vbcast.lane.b32.xlu1 %v2916_v20, 256 }
 0x2c5   : > { %1867 = vmatpush1.bf16.msra.mxu0 %v2281_v58  ;;  %1828 = vmatpush1.bf16.msra.mxu1 %v2284_v11  ;;  %v2328_v11 = vld [vmem:[%s2436_s28 + $0x20] sm:$0xff] }
 0x2c6   : > { %1868 = vmatprep.subr.bf16.mxu0 %v2285_v26  ;;  %1829 = vmatprep.subr.bf16.mxu1 %v2288_v10 }
 0x2c8   : > { %1135 = vbcast.lane.b32.xlu0 %v1121_v22, 280  ;;  %1131 = vbcast.lane.b32.xlu1 %v1121_v22, 272  ;;  %v2317_v22 = vld [vmem:[%s2436_s28 + $0x58] sm:$0xff] }
 0x2c9   : > { %1869 = vmatpush1.bf16.msra.mxu0 %v2287_v37  ;;  %1830 = vmatpush1.bf16.msra.mxu1 %v2290_v39  ;;  %v2329_v37 = vld [vmem:[%s2436_s28 + $0x28] sm:$0xff] }
 0x2ca   : > { %1870 = vmatprep.subr.bf16.mxu0 %v2291_v38  ;;  %1831 = vmatprep.subr.bf16.mxu1 %v2294_v8  ;;  %v2330_v8 = vld [vmem:[%s2436_s28 + $0x30] sm:$0xff] }
 0x2cc   : > { %1188 = vbcast.lane.b32.xlu0 %v1178_v27, 272  ;;  %1180 = vbcast.lane.b32.xlu1 %v1178_v27, 256 }
 0x2cd   : > { %1871 = vmatpush1.bf16.msra.mxu0 %v2293_v42  ;;  %1832 = vmatpush1.bf16.msra.mxu1 %v2296_v48 }
 0x2ce   : > { %1872 = vmatprep.subr.bf16.mxu0 %v2297_v47  ;;  %v2331_v47 = vld [vmem:[%s2436_s28 + $0x38] sm:$0xff] }
 0x2d0   : > { %1192 = vbcast.lane.b32.xlu0 %v1178_v27, 280  ;;  %1169 = vbcast.lane.b32.xlu1 %v2916_v20, 272 }
 0x2d1   : > { %1873 = vmatpush1.bf16.msra.mxu0 %v2299_v52 }
 0x2d4   : > { %1154 = vbcast.lane.b32.xlu1 %v1140_v28, 280 }
 0x2d8   : > { %1173 = vbcast.lane.b32.xlu1 %v2916_v20, 280 }
 0x32a   : > { %v1128_v53 = vpop.permute.xlu0 %1127  ;;  %v1124_v12 = vpop.permute.xlu1 %1123 }
 0x32b   : > { %v3037_v56 = vmul.f32 %v2312_v13, %v1128_v53  ;;  %v3040_v14 = vmul.f32 %v2313_v31, %v1128_v53  ;;  %v3043_v30 = vmul.f32 %v2314_v15, %v1124_v12  ;;  %v3046_v60 = vmul.f32 %v2315_v43, %v1124_v12 }
 0x32d   : > { %v1226_v16 = vmax.f32 %v3043_v30, %v3037_v56  ;;  %v1235_v18 = vmax.f32 %v3046_v60, %v3040_v14  ;;  %v1298_v25 = vadd.f32 %v3037_v56, %v3043_v30  ;;  %v1307_v21 = vadd.f32 %v3040_v14, %v3046_v60 }
 0x32e   : > { %v1166_v0 = vpop.permute.xlu0 %1165  ;;  %v1143_v3 = vpop.permute.xlu1 %1142 }
 0x32f   : > { %v3055_v17 = vmul.f32 %v2318_v4, %v1143_v3  ;;  %v3058_v20 = vmul.f32 %v2319_v6, %v1143_v3  ;;  %v3077_v29 = vmul.f32 %v2320_v49, %v1166_v0  ;;  %v3080_v33 = vmul.f32 %v2321_v9, %v1166_v0 }
 0x331   : > { %3371 = vst [vmem:[#allocation5_spill] sm:$0xff] %v3080_v33 }
 0x332   : > { %v1151_v57 = vpop.permute.xlu0 %1150  ;;  %v1147_v7 = vpop.permute.xlu1 %1146 }
 0x333   : > { %v3049_v62 = vmul.f32 %v2316_v61, %v1147_v7  ;;  %v3052_v63 = vmul.f32 %v2317_v22, %v1147_v7  ;;  %v3083_v41 = vmul.f32 %v2322_v50, %v1151_v57  ;;  %v3086_v34 = vmul.f32 %v2323_v32, %v1151_v57 }
 0x335   : > { %v1244_v19 = vmax.f32 %v3055_v17, %v3049_v62  ;;  %v1253_v23 = vmax.f32 %v3058_v20, %v3052_v63  ;;  %v1316_v27 = vadd.f32 %v3049_v62, %v3055_v17  ;;  %v1325_v40 = vadd.f32 %v3052_v63, %v3058_v20 }
 0x336   : > { %v1185_v28 = vpop.permute.xlu0 %1184  ;;  %v1162_v35 = vpop.permute.xlu1 %1161 }
 0x337   : > { %v3089_v44 = vmul.f32 %v2324_v24, %v1185_v28  ;;  %v3092_v54 = vmul.f32 %v2325_v46, %v1185_v28  ;;  %v3095_v55 = vmul.f32 %v2326_v45, %v1162_v35  ;;  %v3098_v36 = vmul.f32 %v2327_v51, %v1162_v35  ;;  %v2332_v35 = vld [vmem:[%s2436_s28 + $0xe0] sm:$0xff] }
 0x338   : > { %v3107_v39 = vmax.f32 %v1244_v19, %v3083_v41  ;;  %v3110_v38 = vmax.f32 %v1253_v23, %v3086_v34  ;;  %v3119_v52 = vadd.f32 %v1316_v27, %v3083_v41  ;;  %v3122_v53 = vadd.f32 %v1325_v40, %v3086_v34  ;;  %v2334_v23 = vld [vmem:[%s2436_s28 + $0xc0] sm:$0xff] }
 0x339   : > { %3372 = vst [vmem:[#allocation6_spill] sm:$0xff] %v3089_v44  ;;  %3373 = vst [vmem:[#allocation7_spill] sm:$0xff] %v3092_v54  ;;  %v1262_v31 = vmax.f32 %v3095_v55, %v3077_v29  ;;  %v1271_v57 = vmax.f32 %v3098_v36, %v3080_v33  ;;  %v3134_v7 = vadd.f32 %v3077_v29, %v3095_v55 }
 0x33a   : > { %v1136_v58 = vpop.permute.xlu0 %1135  ;;  %v1132_v59 = vpop.permute.xlu1 %1131  ;;  %v3138_v15 = vadd.f32 %v3080_v33, %v3098_v36 }
 0x33b   : > { %v3101_v26 = vmul.f32 %v2328_v11, %v1132_v59  ;;  %v3104_v10 = vmul.f32 %v2329_v37, %v1132_v59  ;;  %v3113_v42 = vmul.f32 %v2330_v8, %v1136_v58  ;;  %v3116_v48 = vmul.f32 %v2331_v47, %v1136_v58  ;;  %v2336_v47 = vld [vmem:[%s2436_s28 + $0xf0] sm:$0xff] }
 0x33d   : > { %v1227_v12 = vmax.f32 %v1226_v16, %v3101_v26  ;;  %v1236_v0 = vmax.f32 %v1235_v18, %v3104_v10  ;;  %v1299_v3 = vadd.f32 %v1298_v25, %v3101_v26  ;;  %v1308_v13 = vadd.f32 %v1307_v21, %v3104_v10  ;;  %v2333_v18 = vld [vmem:[%s2436_s28 + $0xe8] sm:$0xff] }
 0x33e   : > { %v1189_v43 = vpop.permute.xlu0 %1188  ;;  %v1181_v61 = vpop.permute.xlu1 %1180  ;;  %v2335_v21 = vld [vmem:[%s2436_s28 + $0xc8] sm:$0xff] }
 0x33f   : > { %v1228_v22 = vmax.f32 %v1227_v12, %v3113_v42  ;;  %v1237_v4 = vmax.f32 %v1236_v0, %v3116_v48  ;;  %v1300_v6 = vadd.f32 %v1299_v3, %v3113_v42  ;;  %v1309_v28 = vadd.f32 %v1308_v13, %v3116_v48  ;;  %v2337_v0 = vld [vmem:[%s2436_s28 + $0xf8] sm:$0xff] }
 0x340   : > { %v3145_v16 = vmul.f32 %v2332_v35, %v1189_v43  ;;  %v3148_v19 = vmul.f32 %v2333_v18, %v1189_v43  ;;  %v3151_v25 = vmul.f32 %v2334_v23, %v1181_v61  ;;  %v3154_v27 = vmul.f32 %v2335_v21, %v1181_v61 }
 0x341   : > { %v1229_v40 = vrot.slane %v1228_v22, 4  ;;  %v1238_v49 = vrot.slane %v1237_v4, 4  ;;  %v1301_v9 = vrot.slane %v1300_v6, 4  ;;  %v1310_v50 = vrot.slane %v1309_v28, 4 }
 0x342   : > { %3374 = vst [vmem:[#allocation8_spill] sm:$0xff] %v3145_v16  ;;  %3375 = vst [vmem:[#allocation9_spill] sm:$0xff] %v3148_v19  ;;  %v1280_v32 = vmax.f32 %v3151_v25, %v3089_v44  ;;  %v1289_v24 = vmax.f32 %v3154_v27, %v3092_v54  ;;  %v1352_v46 = vadd.f32 %v3089_v44, %v3151_v25  ;;  %v1193_v51 = vpop.permute.xlu0 %1192  ;;  %v1170_v58 = vpop.permute.xlu1 %1169 }
 0x343   : > { %3376 = vst [vmem:[#allocation10_spill] sm:$0xff] %v3151_v25  ;;  %3377 = vst [vmem:[#allocation11_spill] sm:$0xff] %v3154_v27  ;;  %v1361_v45 = vadd.f32 %v3092_v54, %v3154_v27  ;;  %v1230_v59 = vmax.f32 %v1228_v22, %v1229_v40  ;;  %v3164_v11 = vmax.f32 %v1237_v4, %v1238_v49 }
 0x344   : > { %v1302_v37 = vadd.f32 %v1301_v9, %v1300_v6  ;;  %v3166_v8 = vadd.f32 %v1310_v50, %v1309_v28  ;;  %v3169_v12 = vmul.f32 %v2336_v47, %v1193_v51  ;;  %v3172_v3 = vmul.f32 %v2337_v0, %v1193_v51  ;;  %v2338_v9 = vld [vmem:[%s2436_s28 + $0xa0] sm:$0xff] }
 0x345   : > { %v1281_v13 = vmax.f32 %v1280_v32, %v3145_v16  ;;  %v1290_v43 = vmax.f32 %v1289_v24, %v3148_v19  ;;  %v1231_v61 = vrot.slane %v1230_v59, 2  ;;  %v1353_v18 = vadd.f32 %v1352_v46, %v3145_v16  ;;  %v2339_v32 = vld [vmem:[%s2436_s28 + $0xa8] sm:$0xff] }
 0x346   : > { %3378 = vst [vmem:[#allocation12_spill] sm:$0xff] %v3169_v12  ;;  %3379 = vst [vmem:[#allocation13_spill] sm:$0xff] %v3172_v3  ;;  %v1303_v4 = vrot.slane %v1302_v37, 2  ;;  %v1362_v23 = vadd.f32 %v1361_v45, %v3148_v19  ;;  %v1155_v21 = vpop.permute.xlu1 %1154  ;;  %v3187_v50 = vmul.f32 %v2338_v9, %v1170_v58  ;;  %v3190_v24 = vmul.f32 %v2339_v32, %v1170_v58  ;;  %v2340_v32 = vld [vmem:[%s2436_s28 + $0x70] sm:$0xff] }
 0x347   : > { %v1282_v28 = vmax.f32 %v1281_v13, %v3169_v12  ;;  %v1291_v35 = vmax.f32 %v1290_v43, %v3172_v3  ;;  %v3182_v40 = vmax.f32 %v1230_v59, %v1231_v61  ;;  %v1354_v0 = vadd.f32 %v1353_v18, %v3169_v12 }
 0x348   : > { %v3184_v49 = vadd.f32 %v1303_v4, %v1302_v37  ;;  %3380 = vst [vmem:[#allocation14_spill] sm:$0xff] %v3187_v50  ;;  %3381 = vst [vmem:[#allocation15_spill] sm:$0xff] %v3190_v24  ;;  %v1363_v46 = vadd.f32 %v1362_v23, %v3172_v3  ;;  %v1263_v37 = vmax.f32 %v1262_v31, %v3187_v50  ;;  %v2341_v31 = vld [vmem:[%s2436_s28 + $0x78] sm:$0xff] }
 0x349   : > { %v1283_v51 = vrot.slane %v1282_v28, 4  ;;  %v1292_v47 = vrot.slane %v1291_v35, 4  ;;  %v1272_v13 = vmax.f32 %v1271_v57, %v3190_v24  ;;  %v1355_v61 = vrot.slane %v1354_v0, 4 }
 0x34a   : > { %v1364_v4 = vrot.slane %v1363_v46, 4  ;;  %v1174_v9 = vpop.permute.xlu1 %1173  ;;  %v1335_v18 = vadd.f32 %v3134_v7, %v3187_v50  ;;  %v1344_v23 = vadd.f32 %v3138_v15, %v3190_v24  ;;  %v3205_v59 = vmul.f32 %v2340_v32, %v1155_v21 }
 0x34b   : > { %v1284_v43 = vmax.f32 %v1282_v28, %v1283_v51  ;;  %v3198_v58 = vmax.f32 %v1291_v35, %v1292_v47  ;;  %v3208_v6 = vmul.f32 %v2341_v31, %v1155_v21  ;;  %v1356_v28 = vadd.f32 %v1355_v61, %v1354_v0  ;;  %v2342_v51 = vld [vmem:[%s2436_s28 + $0xb0] sm:$0xff]  ;;  %v2343_v61 = vld [vmem:[%s2436_s28 + $0xb8] sm:$0xff]  ;;  %s2108_s28 = sld [smem:[#allocation2 + $0x2]] }
 0x34c   : > { %v3210_v35 = vadd.f32 %v1364_v4, %v1363_v46  ;;  %v3213_v47 = vmul.f32 %v2342_v51, %v1174_v9  ;;  %v1246_v7 = vmax.f32 %v3107_v39, %v3205_v59  ;;  %v1318_v32 = vadd.f32 %v3119_v52, %v3205_v59 }
 0x34d   : > { %v1285_v57 = vrot.slane %v1284_v43, 2  ;;  %v1255_v15 = vmax.f32 %v3110_v38, %v3208_v6  ;;  %v1327_v21 = vadd.f32 %v3122_v53, %v3208_v6  ;;  %v1357_v0 = vrot.slane %v1356_v28, 2 }
 0x34e   : > { %3382 = vst [vmem:[#allocation16_spill] sm:$0xff] %v3213_v47  ;;  %v3227_v4 = vmul.f32 %v2343_v61, %v1174_v9  ;;  %v1247_v51 = vrot.slane %v1246_v7, 4  ;;  %v1319_v39 = vrot.slane %v1318_v32, 4  ;;  %v1264_v38 = vmax.f32 %v1263_v37, %v3213_v47 }
 0x34f   : > { %v3223_v31 = vmax.f32 %v1284_v43, %v1285_v57  ;;  %v1256_v45 = vrot.slane %v1255_v15, 4  ;;  %v1328_v22 = vrot.slane %v1327_v21, 4  ;;  %v3229_v3 = vadd.f32 %v1357_v0, %v1356_v28 }
 0x350   : > { %3383 = vst [vmem:[#allocation17_spill] sm:$0xff] %v3227_v4  ;;  %v1273_v52 = vmax.f32 %v1272_v13, %v3227_v4  ;;  %v1336_v53 = vadd.f32 %v1335_v18, %v3213_v47  ;;  %v1248_v43 = vmax.f32 %v1246_v7, %v1247_v51  ;;  %v1320_v12 = vadd.f32 %v1319_v39, %v1318_v32 }
 0x351   : > { %v1257_v57 = vmax.f32 %v1255_v15, %v1256_v45  ;;  %v1329_v19 = vadd.f32 %v1328_v22, %v1327_v21  ;;  %v1359_v46 = vrot.slane %v3229_v3, 1  ;;  %v1265_v9 = vrot.slane %v1264_v38, 4 }
 0x352   : > { %v1274_v61 = vrot.slane %v1273_v52, 4  ;;  %v1337_v16 = vrot.slane %v1336_v53, 4  ;;  %v1249_v54 = vrot.slane %v1248_v43, 2  ;;  %v1321_v27 = vrot.slane %v1320_v12, 2 }
 0x353   : > { %v1258_v44 = vrot.slane %v1257_v57, 2  ;;  %v1330_v28 = vrot.slane %v1329_v19, 2  ;;  %v1266_v0 = vmax.f32 %v1264_v38, %v1265_v9  ;;  %v1345_v13 = vadd.f32 %v1344_v23, %v3227_v4 }
 0x354   : > { %v1275_v25 = vmax.f32 %v1273_v52, %v1274_v61  ;;  %v1338_v37 = vadd.f32 %v1337_v16, %v1336_v53  ;;  %v1250_v24 = vmax.f32 %v1248_v43, %v1249_v54  ;;  %v1322_v7 = vadd.f32 %v1321_v27, %v1320_v12 }
 0x355   : > { %v1259_v18 = vmax.f32 %v1257_v57, %v1258_v44  ;;  %v1331_v45 = vadd.f32 %v1330_v28, %v1329_v19  ;;  %v1267_v15 = vrot.slane %v1266_v0, 2  ;;  %v1346_v21 = vrot.slane %v1345_v13, 4 }
 0x356   : > { %v1276_v22 = vrot.slane %v1275_v25, 2  ;;  %v1339_v32 = vrot.slane %v1338_v37, 2  ;;  %v1251_v51 = vrot.slane %v1250_v24, 1  ;;  %v1323_v39 = vrot.slane %v1322_v7, 1 }
 0x357   : > { %v3384_v47 = vrot.slane %v3164_v11, 2  ;;  %v1260_v33 = vrot.slane %v1259_v18, 1  ;;  %v1268_v38 = vmax.f32 %v1266_v0, %v1267_v15  ;;  %v1347_v16 = vadd.f32 %v1346_v21, %v1345_v13 }
 0x358   : > { %v1340_v52 = vadd.f32 %v1339_v32, %v1338_v37  ;;  %v1277_v53 = vmax.f32 %v1275_v25, %v1276_v22  ;;  %v1252_v23 = vmax.f32 %v1250_v24, %v1251_v51  ;;  %v1324_v54 = vadd.f32 %v1323_v39, %v1322_v7 }
 0x359   : > { %v1241_v50 = vmax.f32 %v3164_v11, %v3384_v47  ;;  %v1261_v27 = vmax.f32 %v1259_v18, %v1260_v33  ;;  %v1269_v19 = vrot.slane %v1268_v38, 1  ;;  %v1348_v43 = vrot.slane %v1347_v16, 2 }
 0x35a   : > { %v1341_v12 = vrot.slane %v1340_v52, 1  ;;  %v1278_v57 = vrot.slane %v1277_v53, 1  ;;  %v1373_v9 = vmul.f32 0.03125, %v1324_v54  ;;  %v1294_v28 = vrot.slane %v3198_v58, 2 }
 0x35b   : > { %v1242_v44 = vrot.slane %v1241_v50, 1  ;;  %v3385_v4 = vrot.slane %v3182_v40, 1  ;;  %v1349_v0 = vadd.f32 %v1348_v43, %v1347_v16  ;;  %v1270_v25 = vmax.f32 %v1268_v38, %v1269_v19 }
 0x35c   : > { %v1342_v47 = vadd.f32 %v1341_v12, %v1340_v52  ;;  %v1279_v37 = vmax.f32 %v1277_v53, %v1278_v57  ;;  %v1295_v24 = vmax.f32 %v3198_v58, %v1294_v28  ;;  %v1287_v13 = vrot.slane %v3223_v31, 1 }
 0x35d   : > { %v1243_v61 = vmax.f32 %v1241_v50, %v1242_v44  ;;  %v1234_v11 = vmax.f32 %v3182_v40, %v3385_v4  ;;  %v3386_v15 = vrot.slane %v3166_v8, 2  ;;  %v1332_v4 = vrot.slane %v1331_v45, 1 }
 0x35e   : > { %v1296_v22 = vrot.slane %v1295_v24, 1  ;;  %v1288_v32 = vmax.f32 %v3223_v31, %v1287_v13  ;;  %v1350_v21 = vrot.slane %v1349_v0, 1  ;;  %v3387_v58 = vrot.slane %v3210_v35, 2 }
 0x35f   : > { %v1390_v33 = vsel %vm556_vm3, %v1261_v27, %v1243_v61  ;;  %v1387_v18 = vsel %vm556_vm3, %v1252_v23, %v1234_v11  ;;  %v1313_v40 = vadd.f32 %v3386_v15, %v3166_v8  ;;  %v1333_v38 = vadd.f32 %v1332_v4, %v1331_v45 }
 0x360   : > { %v1391_v50 = vsel %vm558_vm4, %v1279_v37, %v1390_v33  ;;  %v1388_v7 = vsel %vm558_vm4, %v1270_v25, %v1387_v18  ;;  %v1367_v51 = vadd.f32 %v3387_v58, %v3210_v35  ;;  %v3388_v52 = vrot.slane %v3184_v49, 1 }
 0x361   : > { %v1314_v39 = vrot.slane %v1313_v40, 1  ;;  %v1360_v53 = vadd.f32 %v1359_v46, %v3229_v3  ;;  %v1297_v23 = vmax.f32 %v1295_v24, %v1296_v22  ;;  %v1389_v8 = vsel %vm560_vm5, %v1288_v32, %v1388_v7 }
 0x362   : > { %v1306_v16 = vadd.f32 %v3388_v52, %v3184_v49  ;;  %v1351_v54 = vadd.f32 %v1350_v21, %v1349_v0  ;;  %v1368_v44 = vrot.slane %v1367_v51, 1  ;;  %v1411_v27 = vpack.c.bf16 %v1389_v8, %v1389_v8 }
 0x363   : > { %v1315_v31 = vadd.f32 %v1314_v39, %v1313_v40  ;;  %v1374_v19 = vmul.f32 0.03125, %v1333_v38  ;;  %v1392_v43 = vsel %vm560_vm5, %v1297_v23, %v1391_v50  ;;  %v1375_v45 = vmul.f32 0.03125, %v1342_v47 }
 0x364   : > { %v1371_v12 = vmul.f32 0.03125, %v1306_v16  ;;  %v1369_v35 = vadd.f32 %v1368_v44, %v1367_v51  ;;  %v1376_v57 = vmul.f32 0.03125, %v1351_v54  ;;  %v1412_v61 = vpack.c.bf16 %v1392_v43, %v1392_v43 }
 0x365   : > { %v1372_v28 = vmul.f32 0.03125, %v1315_v31  ;;  %v1377_v11 = vmul.f32 0.03125, %v1360_v53  ;;  %v1480_v13 = vstv %s2108_s28  ;;  %v2373_v44 = vmov 1966171168  }
 0x366   : > { %v1403_v49 = vsel %vm556_vm3, %v1373_v9, %v1371_v12  ;;  %1833 = vmatprep.mubr.bf16.mxu1 %v1412_v61  ;;  %v1378_v46 = vmul.f32 0.03125, %v1369_v35 }
 0x367   : > { %v1404_v3 = vsel %vm558_vm4, %v1375_v45, %v1403_v49  ;;  %v1406_v0 = vsel %vm556_vm3, %v1374_v19, %v1372_v28  ;;  %1834 = vmatmul.mubr.bf16.vlgmr.msra.gmra.mrb[0].mxu1 %v1411_v27  ;;  %v1897_v27 = vunpack.c.l.s4 %v2373_v44  ;;  %v3401_v44 = vld [vmem:[#allocation13_spill] sm:$0xff] }
 0x368   : > { %v1405_v37 = vsel %vm560_vm5, %v1377_v11, %v1404_v3  ;;  %v1407_v25 = vsel %vm558_vm4, %v1376_v57, %v1406_v0 }
 0x369   : > { %v1408_v24 = vsel %vm560_vm5, %v1378_v46, %v1407_v25  ;;  %v1413_v33 = vpack.c.bf16 %v1405_v37, %v1405_v37  ;;  %v1898_v31 = vunpack.c.0.s8 %v1897_v27 }
 0x36a   : > { %v1414_v47 = vpack.c.bf16 %v1408_v24, %v1408_v24 }
 0x36b   : > { %v1901_v12 = vsub.s32 %v1898_v31, %v2471_v1 }
 0x36c   : > { %1874 = vmatprep.mubr.bf16.mxu0 %v1414_v47 }
 0x36d   : > { %1875 = vmatmul.mubr.bf16.vlgmr.msra.gmra.mrb[0].mxu0 %v1413_v33 }
 0x43a   : > { %v1835_v9 = vpop.f32.mrb[0].mxu1 }
 0x43b   : > { %v1837_v18 = vpop.f32.mrb[1].mxu1  ;;  %v1836_v50 = vadd.f32 %v1835_v9, %v1480_v13 }
 0x43c   : > { %v1839_v7 = vpop.f32.mrb[2].mxu1  ;;  %v1838_v15 = vadd.f32 %v1837_v18, %v1480_v13 }
 0x43d   : > { %v1840_v40 = vpop.f32.mrb[3].mxu1 }
 0x440   : > { %v1876_v4 = vpop.f32.mrb[0].mxu0 }
 0x441   : > { %v1877_v22 = vadd.f32 %v1876_v4, %v1836_v50  ;;  %v1878_v32 = vpop.f32.mrb[1].mxu0  ;;  %v3393_v4 = vld [vmem:[#allocation17_spill] sm:$0xff] }
 0x442   : > { %v1879_v21 = vadd.f32 %v1878_v32, %v1838_v15  ;;  %v1880_v58 = vpop.f32.mrb[2].mxu0  ;;  %v3395_v32 = vld [vmem:[#allocation11_spill] sm:$0xff] }
 0x443   : > { %v1883_v51 = vsub.f32 0.0, %v1877_v22  ;;  %v1881_v39 = vpop.f32.mrb[3].mxu0  ;;  %v3394_v22 = vld [vmem:[#allocation10_spill] sm:$0xff] }
 0x444   : > { %v1884_v38 = vsub.f32 0.0, %v1879_v21  ;;  %v3396_v58 = vld [vmem:[#allocation6_spill] sm:$0xff]  ;;  %v3397_v39 = vld [vmem:[#allocation7_spill] sm:$0xff] }
 0x445   : > { %v1885_v52 = vmul.f32 1.442695, %v1883_v51 }
 0x446   : > { %v1887_v16 = vmul.f32 1.442695, %v1884_v38 }
 0x447   : > { %2304 = vpow2.f32 %v1885_v52  ;;  %v3398_v52 = vld [vmem:[#allocation8_spill] sm:$0xff] }
 0x448   : > { %2306 = vpow2.f32 %v1887_v16 }
 0x451   : > { %v2305_v53 = vpop.eup %2304 }
 0x452   : > { %v2307_v23 = vpop.eup %2306  ;;  %v1889_v8 = vadd.f32 1.0, %v2305_v53  ;;  %v3399_v53 = vld [vmem:[#allocation9_spill] sm:$0xff] }
 0x453   : > { %v1890_v54 = vadd.f32 1.0, %v2307_v23 }
 0x454   : > { %2308 = vrcp.f32 %v1889_v8  ;;  %v3400_v8 = vld [vmem:[#allocation12_spill] sm:$0xff] }
 0x455   : > { %2310 = vrcp.f32 %v1890_v54 }
 0x45e   : > { %v2309_v19 = vpop.eup %2308 }
 0x45f   : > { %v2311_v43 = vpop.eup %2310 }
 0x460   : > { %v1895_v35 = vcombine.low %v2309_v19, %v2311_v43 }
 0x462   : > { %v1902_v57 = vrot.slane %v1895_v35, %v1901_v12 }
 0x464   : > { %v1903_v45 = vcombine.high %v1902_v57, %v1902_v57  ;;  %v1910_v61 = vrot.slane %v1902_v57, %v1901_v12 }
 0x466   : > { %v1917_v28 = vrot.slane %v1903_v45, %v1901_v12  ;;  %v1918_v11 = vcombine.high %v1910_v61, %v1910_v61  ;;  %v1923_v49 = vrot.slane %v1910_v61, %v2474_v2  ;;  %v1927_v3 = vrot.slane %v1910_v61, %v2484_v5 }
 0x468   : > { %v1919_v46 = vcombine.high %v1917_v28, %v1917_v28  ;;  %v1931_v1 = vrot.slane %v1917_v28, %v2474_v2  ;;  %v1935_v0 = vrot.slane %v1917_v28, %v2484_v5  ;;  %v1939_v37 = vrot.slane %v1918_v11, %v2474_v2 }
 0x469   : > { %v1943_v25 = vrot.slane %v1918_v11, %v2484_v5  ;;  %v1960_v24 = vmul.f32 %v1923_v49, %v3043_v30  ;;  %v1961_v33 = vmul.f32 %v1927_v3, %v3046_v60  ;;  %v1962_v47 = vmul.f32 %v1923_v49, %v3037_v56 }
 0x46a   : > { %v1947_v13 = vrot.slane %v1919_v46, %v2474_v2  ;;  %v1951_v9 = vrot.slane %v1919_v46, %v2484_v5  ;;  %v1963_v18 = vmul.f32 %v1927_v3, %v3040_v14  ;;  %v1964_v50 = vmul.f32 %v1923_v49, %v3101_v26 }
 0x46b   : > { %v1965_v7 = vmul.f32 %v1927_v3, %v3104_v10  ;;  %v1966_v15 = vmul.f32 %v1923_v49, %v3113_v42  ;;  %v1967_v30 = vmul.f32 %v1927_v3, %v3116_v48  ;;  %v1968_v56 = vmul.f32 %v1931_v1, %v3055_v17  ;;  %1992 = vst [vmem:[%s3276_s5] sm:$0xff] %v1960_v24  ;;  %v3390_v42 = vld [vmem:[#allocation14_spill] sm:$0xff] }
 0x46c   : > { %1993 = vst [vmem:[%s3276_s5 + $0x8] sm:$0xff] %v1961_v33  ;;  %1994 = vst [vmem:[%s3276_s5 + $0x10] sm:$0xff] %v1962_v47  ;;  %v1969_v2 = vmul.f32 %v1935_v0, %v3058_v20  ;;  %v1970_v5 = vmul.f32 %v1931_v1, %v3049_v62  ;;  %v1971_v14 = vmul.f32 %v1935_v0, %v3052_v63 }
 0x46d   : > { %v1972_v60 = vmul.f32 %v1931_v1, %v3083_v41  ;;  %1995 = vst [vmem:[%s3276_s5 + $0x18] sm:$0xff] %v1963_v18  ;;  %1996 = vst [vmem:[%s3276_s5 + $0x20] sm:$0xff] %v1964_v50  ;;  %v1973_v17 = vmul.f32 %v1935_v0, %v3086_v34  ;;  %v1974_v26 = vmul.f32 %v1931_v1, %v3205_v59  ;;  %v3389_v41 = vld [vmem:[#allocation5_spill] sm:$0xff]  ;;  %v3392_v59 = vld [vmem:[#allocation16_spill] sm:$0xff] }
 0x46e   : > { %v1975_v10 = vmul.f32 %v1935_v0, %v3208_v6  ;;  %v1976_v20 = vmul.f32 %v1939_v37, %v3095_v55  ;;  %1997 = vst [vmem:[%s3276_s5 + $0x28] sm:$0xff] %v1965_v7  ;;  %1998 = vst [vmem:[%s3276_s5 + $0x30] sm:$0xff] %v1966_v15  ;;  %v1977_v62 = vmul.f32 %v1943_v25, %v3098_v36  ;;  %v3391_v55 = vld [vmem:[#allocation15_spill] sm:$0xff] }
 0x46f   : > { %1999 = vst [vmem:[%s3276_s5 + $0x38] sm:$0xff] %v1967_v30  ;;  %2000 = vst [vmem:[%s3276_s5 + $0x40] sm:$0xff] %v1968_v56  ;;  %v1978_v63 = vmul.f32 %v1939_v37, %v3077_v29  ;;  %v1979_v34 = vmul.f32 %v1943_v25, %v3389_v41  ;;  %v1980_v48 = vmul.f32 %v1939_v37, %v3390_v42 }
 0x470   : > { %2001 = vst [vmem:[%s3276_s5 + $0x48] sm:$0xff] %v1969_v2  ;;  %2002 = vst [vmem:[%s3276_s5 + $0x50] sm:$0xff] %v1970_v5  ;;  %v1981_v6 = vmul.f32 %v1943_v25, %v3391_v55  ;;  %v1982_v40 = vmul.f32 %v1939_v37, %v3392_v59  ;;  %v1983_v36 = vmul.f32 %v1943_v25, %v3393_v4 }
 0x471   : > { %2003 = vst [vmem:[%s3276_s5 + $0x58] sm:$0xff] %v1971_v14  ;;  %2004 = vst [vmem:[%s3276_s5 + $0x60] sm:$0xff] %v1972_v60  ;;  %v1984_v29 = vmul.f32 %v1947_v13, %v3394_v22  ;;  %v1985_v21 = vmul.f32 %v1951_v9, %v3395_v32  ;;  %v1986_v51 = vmul.f32 %v1947_v13, %v3396_v58 }
 0x472   : > { %2005 = vst [vmem:[%s3276_s5 + $0x68] sm:$0xff] %v1973_v17  ;;  %2006 = vst [vmem:[%s3276_s5 + $0x70] sm:$0xff] %v1974_v26  ;;  %v1987_v38 = vmul.f32 %v1951_v9, %v3397_v39  ;;  %v1988_v16 = vmul.f32 %v1947_v13, %v3398_v52  ;;  %v1989_v23 = vmul.f32 %v1951_v9, %v3399_v53 }
 0x473   : > { %2007 = vst [vmem:[%s3276_s5 + $0x78] sm:$0xff] %v1975_v10  ;;  %2008 = vst [vmem:[%s3276_s5 + $0x80] sm:$0xff] %v1976_v20  ;;  %v1990_v54 = vmul.f32 %v1947_v13, %v3400_v8  ;;  %v1991_v27 = vmul.f32 %v1951_v9, %v3401_v44 }
 0x474   : > { %2009 = vst [vmem:[%s3276_s5 + $0x88] sm:$0xff] %v1977_v62  ;;  %2010 = vst [vmem:[%s3276_s5 + $0x90] sm:$0xff] %v1978_v63 }
 0x475   : > { %2011 = vst [vmem:[%s3276_s5 + $0x98] sm:$0xff] %v1979_v34  ;;  %2012 = vst [vmem:[%s3276_s5 + $0xa0] sm:$0xff] %v1980_v48 }
 0x476   : > { %2013 = vst [vmem:[%s3276_s5 + $0xa8] sm:$0xff] %v1981_v6  ;;  %2014 = vst [vmem:[%s3276_s5 + $0xb0] sm:$0xff] %v1982_v40 }
 0x477   : > { %2015 = vst [vmem:[%s3276_s5 + $0xb8] sm:$0xff] %v1983_v36  ;;  %2016 = vst [vmem:[%s3276_s5 + $0xc0] sm:$0xff] %v1984_v29 }
 0x478   : > { %2017 = vst [vmem:[%s3276_s5 + $0xc8] sm:$0xff] %v1985_v21  ;;  %2018 = vst [vmem:[%s3276_s5 + $0xd0] sm:$0xff] %v1986_v51 }
 0x479   : > { %2019 = vst [vmem:[%s3276_s5 + $0xd8] sm:$0xff] %v1987_v38  ;;  %2020 = vst [vmem:[%s3276_s5 + $0xe0] sm:$0xff] %v1988_v16 }
 0x47a   : > { %2021 = vst [vmem:[%s3276_s5 + $0xe8] sm:$0xff] %v1989_v23  ;;  %2022 = vst [vmem:[%s3276_s5 + $0xf0] sm:$0xff] %v1990_v54 }
 0x47b   : > { %2023 = vst [vmem:[%s3276_s5 + $0xf8] sm:$0xff] %v1991_v27 }
 0x47c PF: > { %s15_s15 = sadd.s32 1, %s2369_s15  }
 0x47d   : > { %p12_p1 = scmp.ge.s32.totalorder %s15_s15, 4  }
 0x47f   :  { %14 = sbr.rel (!%p12_p1) target bundleno = 1 (0x1), region = 71 }
 0x486   :  { %2048 = vsyncpa [#allocation3], 1 }
 0x487   :  { %2050 = vsyncpa [#allocation3 + $0x1], 1 }

</bundles_post_ra>
